<compile_context>
chip_gen: v5e
topology: v5e:2x2
jax: 0.10.0
libtpu: 0.0.40
codegen_flags: <defaults>
</compile_context>

<pallas_src>
import jax
import jax.numpy as jnp
from jax.experimental import pallas as pl
from jax.experimental.pallas import tpu as pltpu


def autoencoder_kernel(
    x_ref,
    w1_ref, b1_ref,
    w2_ref, b2_ref,
    w34_ref, b34_ref,   # fused Linear(32,16) @ Linear(16,32)
    w5_ref, b5_ref,
    w6_ref, b6_ref,
    o_ref,
):
    x = x_ref[...]

    # ---- encoder ----
    h = jnp.dot(x, w1_ref[...], preferred_element_type=jnp.float32) + b1_ref[...]
    h = jnp.maximum(h, 0.0)                                            # ReLU
    h = jnp.dot(h, w2_ref[...], preferred_element_type=jnp.float32) + b2_ref[...]
    h = jnp.maximum(h, 0.0)                                            # ReLU

    # ---- fused encoder L3 + decoder L4 (no activation between them) ----
    h = jnp.dot(h, w34_ref[...], preferred_element_type=jnp.float32) + b34_ref[...]
    h = jnp.maximum(h, 0.0)                                            # ReLU

    # ---- decoder ----
    h = jnp.dot(h, w5_ref[...], preferred_element_type=jnp.float32) + b5_ref[...]
    h = jnp.maximum(h, 0.0)                                            # ReLU
    h = jnp.dot(h, w6_ref[...], preferred_element_type=jnp.float32) + b6_ref[...]

    o_ref[...] = jax.nn.sigmoid(h).astype(o_ref.dtype)                 # Sigmoid


def autoencoder_forward(x, params, *, tb=256):
    """x: (B, input_size) f32. params: list of 6 (W, b); W is (in, out), b is (1, out)."""
    B, D = x.shape
    (w1, b1), (w2, b2), (w3, b3), (w4, b4), (w5, b5), (w6, b6) = params

    # Algebraic fusion of the activation-free pair L3/L4 (exact up to f32 rounding).
    w34 = jnp.dot(w3, w4, preferred_element_type=jnp.float32)          # (32, 32)
    b34 = jnp.dot(b3, w4, preferred_element_type=jnp.float32) + b4     # (1, 32)

    # Batch tile: big enough to feed the MXU, capped at 256 rows to bound vreg use.
    TB = min(tb, B)
    Bp = pl.cdiv(B, TB) * TB
    xp = x if Bp == B else jnp.pad(x, ((0, Bp - B), (0, 0)))

    weights = [w1, b1, w2, b2, w34, b34, w5, b5, w6, b6]
    in_specs = [pl.BlockSpec((TB, D), lambda i: (i, 0))]
    # Weights/biases: full-array blocks with constant index maps -> fetched once,
    # kept VMEM-resident across all batch-grid steps.
    for w in weights:
        in_specs.append(pl.BlockSpec(w.shape, lambda i: (0, 0)))

    out = pl.pallas_call(
        autoencoder_kernel,
        out_shape=jax.ShapeDtypeStruct((Bp, D), x.dtype),
        grid=(Bp // TB,),
        in_specs=in_specs,
        out_specs=pl.BlockSpec((TB, D), lambda i: (i, 0)),
        compiler_params=pltpu.CompilerParams(
            dimension_semantics=("parallel",),  # shards the batch axis across v7x's 2 TCs
        ),
    )(xp, *weights)

    return out[:B] if Bp != B else out


def init_params(key, input_size):
    """Deterministic synthetic parameters matching the PyTorch module's shapes."""
    dims = [(input_size, 64), (64, 32), (32, 16),    # encoder
            (16, 32), (32, 64), (64, input_size)]    # decoder
    params = []
    for i, (fan_in, fan_out) in enumerate(dims):
        kw, kb, key = jax.random.split(jax.random.fold_in(key, i), 3)
        # Kaiming-uniform-like bound as in torch.nn.Linear default init.
        bound = 1.0 / jnp.sqrt(fan_in)
        W = jax.random.uniform(kw, (fan_in, fan_out), jnp.float32, -bound, bound)
        b = jax.random.uniform(kb, (1, fan_out), jnp.float32, -bound, bound)
        params.append((W, b))
    return params


def reference_forward(x, params):
    """Unfused 6-layer reference matching the PyTorch module exactly."""
    h = x
    for i, (W, b) in enumerate(params):
        h = h @ W + b
        if i in (0, 1, 3, 4):
            h = jnp.maximum(h, 0.0)
    return jax.nn.sigmoid(h)


if __name__ == "__main__":
    key = jax.random.PRNGKey(0)
    input_size = 128
    batch = 512          # two grid steps of TB=256 -> exercises weight residency + parallel axis

    kx, kp = jax.random.split(key)
    x = jax.random.uniform(kx, (batch, input_size), jnp.float32)
    params = init_params(kp, input_size)

    out = autoencoder_forward(x, params, tb=256)
    jax.block_until_ready(out)

    ref = reference_forward(x, params)
    assert out.shape == (batch, input_size)
    # W3@W4 fusion is exact up to f32 rounding; tolerance stays tight.
    assert jnp.allclose(out, ref, atol=2e-5, rtol=1e-4)

    print("KERNEL_OK")
</pallas_src>

<mosaic_0001>
module attributes {stable_mosaic.version = 11 : i64} {
  func.func @autoencoder_kernel(%arg0: i32, %arg1: memref<256x128xf32, #tpu.memory_space<vmem>>, %arg2: memref<128x64xf32, #tpu.memory_space<vmem>>, %arg3: memref<1x64xf32, #tpu.memory_space<vmem>>, %arg4: memref<64x32xf32, #tpu.memory_space<vmem>>, %arg5: memref<1x32xf32, #tpu.memory_space<vmem>>, %arg6: memref<32x32xf32, #tpu.memory_space<vmem>>, %arg7: memref<1x32xf32, #tpu.memory_space<vmem>>, %arg8: memref<32x64xf32, #tpu.memory_space<vmem>>, %arg9: memref<1x64xf32, #tpu.memory_space<vmem>>, %arg10: memref<64x128xf32, #tpu.memory_space<vmem>>, %arg11: memref<1x128xf32, #tpu.memory_space<vmem>>, %arg12: memref<256x128xf32, #tpu.memory_space<vmem>>) attributes {dimension_semantics = [#tpu.dimension_semantics<parallel>], iteration_bounds = array<i64: 2>, scalar_prefetch = 0 : i64, scratch_operands = 0 : i64, tpu.core_type = #tpu.core_type<tc>, window_params = [{transform_indices = @transform_0, window_bounds = array<i64: 256, 128>}, {pipeline_mode = #tpu.pipeline_mode<synchronous>, transform_indices = @transform_1, window_bounds = array<i64: 128, 64>}, {pipeline_mode = #tpu.pipeline_mode<synchronous>, transform_indices = @transform_2, window_bounds = array<i64: 1, 64>}, {pipeline_mode = #tpu.pipeline_mode<synchronous>, transform_indices = @transform_3, window_bounds = array<i64: 64, 32>}, {pipeline_mode = #tpu.pipeline_mode<synchronous>, transform_indices = @transform_4, window_bounds = array<i64: 1, 32>}, {pipeline_mode = #tpu.pipeline_mode<synchronous>, transform_indices = @transform_5, window_bounds = array<i64: 32, 32>}, {pipeline_mode = #tpu.pipeline_mode<synchronous>, transform_indices = @transform_6, window_bounds = array<i64: 1, 32>}, {pipeline_mode = #tpu.pipeline_mode<synchronous>, transform_indices = @transform_7, window_bounds = array<i64: 32, 64>}, {pipeline_mode = #tpu.pipeline_mode<synchronous>, transform_indices = @transform_8, window_bounds = array<i64: 1, 64>}, {pipeline_mode = #tpu.pipeline_mode<synchronous>, transform_indices = @transform_9, window_bounds = array<i64: 64, 128>}, {pipeline_mode = #tpu.pipeline_mode<synchronous>, transform_indices = @transform_10, window_bounds = array<i64: 1, 128>}, {transform_indices = @transform_11, window_bounds = array<i64: 256, 128>}]} {
    %c0 = arith.constant 0 : index
    %c0_0 = arith.constant 0 : index
    %0 = vector.load %arg1[%c0, %c0_0] : memref<256x128xf32, #tpu.memory_space<vmem>>, vector<256x128xf32>
    %c0_1 = arith.constant 0 : index
    %c0_2 = arith.constant 0 : index
    %1 = vector.load %arg2[%c0_1, %c0_2] : memref<128x64xf32, #tpu.memory_space<vmem>>, vector<128x64xf32>
    %cst = arith.constant dense<0.000000e+00> : vector<256x64xf32>
    %2 = tpu.matmul %0, %1, %cst {dimension_numbers = #tpu.dot_dimension_numbers<[1], [0], [0], [1], [0, 0, 1, 1], [], []>} : vector<256x128xf32>, vector<128x64xf32>, vector<256x64xf32> -> vector<256x64xf32>
    %c0_3 = arith.constant 0 : index
    %c0_4 = arith.constant 0 : index
    %3 = vector.load %arg3[%c0_3, %c0_4] : memref<1x64xf32, #tpu.memory_space<vmem>>, vector<1x64xf32>
    %4 = vector.broadcast %3 : vector<1x64xf32> to vector<256x64xf32>
    %5 = arith.addf %2, %4 : vector<256x64xf32>
    %cst_5 = arith.constant 0.000000e+00 : f32
    %6 = vector.broadcast %cst_5 : f32 to vector<256x64xf32>
    %7 = arith.maximumf %5, %6 : vector<256x64xf32>
    %c0_6 = arith.constant 0 : index
    %c0_7 = arith.constant 0 : index
    %8 = vector.load %arg4[%c0_6, %c0_7] : memref<64x32xf32, #tpu.memory_space<vmem>>, vector<64x32xf32>
    %cst_8 = arith.constant dense<0.000000e+00> : vector<256x32xf32>
    %9 = tpu.matmul %7, %8, %cst_8 {dimension_numbers = #tpu.dot_dimension_numbers<[1], [0], [0], [1], [0, 0, 1, 1], [], []>} : vector<256x64xf32>, vector<64x32xf32>, vector<256x32xf32> -> vector<256x32xf32>
    %c0_9 = arith.constant 0 : index
    %c0_10 = arith.constant 0 : index
    %10 = vector.load %arg5[%c0_9, %c0_10] : memref<1x32xf32, #tpu.memory_space<vmem>>, vector<1x32xf32>
    %11 = vector.broadcast %10 : vector<1x32xf32> to vector<256x32xf32>
    %12 = arith.addf %9, %11 : vector<256x32xf32>
    %cst_11 = arith.constant 0.000000e+00 : f32
    %13 = vector.broadcast %cst_11 : f32 to vector<256x32xf32>
    %14 = arith.maximumf %12, %13 : vector<256x32xf32>
    %c0_12 = arith.constant 0 : index
    %c0_13 = arith.constant 0 : index
    %15 = vector.load %arg6[%c0_12, %c0_13] : memref<32x32xf32, #tpu.memory_space<vmem>>, vector<32x32xf32>
    %cst_14 = arith.constant dense<0.000000e+00> : vector<256x32xf32>
    %16 = tpu.matmul %14, %15, %cst_14 {dimension_numbers = #tpu.dot_dimension_numbers<[1], [0], [0], [1], [0, 0, 1, 1], [], []>} : vector<256x32xf32>, vector<32x32xf32>, vector<256x32xf32> -> vector<256x32xf32>
    %c0_15 = arith.constant 0 : index
    %c0_16 = arith.constant 0 : index
    %17 = vector.load %arg7[%c0_15, %c0_16] : memref<1x32xf32, #tpu.memory_space<vmem>>, vector<1x32xf32>
    %18 = vector.broadcast %17 : vector<1x32xf32> to vector<256x32xf32>
    %19 = arith.addf %16, %18 : vector<256x32xf32>
    %cst_17 = arith.constant 0.000000e+00 : f32
    %20 = vector.broadcast %cst_17 : f32 to vector<256x32xf32>
    %21 = arith.maximumf %19, %20 : vector<256x32xf32>
    %c0_18 = arith.constant 0 : index
    %c0_19 = arith.constant 0 : index
    %22 = vector.load %arg8[%c0_18, %c0_19] : memref<32x64xf32, #tpu.memory_space<vmem>>, vector<32x64xf32>
    %cst_20 = arith.constant dense<0.000000e+00> : vector<256x64xf32>
    %23 = tpu.matmul %21, %22, %cst_20 {dimension_numbers = #tpu.dot_dimension_numbers<[1], [0], [0], [1], [0, 0, 1, 1], [], []>} : vector<256x32xf32>, vector<32x64xf32>, vector<256x64xf32> -> vector<256x64xf32>
    %c0_21 = arith.constant 0 : index
    %c0_22 = arith.constant 0 : index
    %24 = vector.load %arg9[%c0_21, %c0_22] : memref<1x64xf32, #tpu.memory_space<vmem>>, vector<1x64xf32>
    %25 = vector.broadcast %24 : vector<1x64xf32> to vector<256x64xf32>
    %26 = arith.addf %23, %25 : vector<256x64xf32>
    %cst_23 = arith.constant 0.000000e+00 : f32
    %27 = vector.broadcast %cst_23 : f32 to vector<256x64xf32>
    %28 = arith.maximumf %26, %27 : vector<256x64xf32>
    %c0_24 = arith.constant 0 : index
    %c0_25 = arith.constant 0 : index
    %29 = vector.load %arg10[%c0_24, %c0_25] : memref<64x128xf32, #tpu.memory_space<vmem>>, vector<64x128xf32>
    %cst_26 = arith.constant dense<0.000000e+00> : vector<256x128xf32>
    %30 = tpu.matmul %28, %29, %cst_26 {dimension_numbers = #tpu.dot_dimension_numbers<[1], [0], [0], [1], [0, 0, 1, 1], [], []>} : vector<256x64xf32>, vector<64x128xf32>, vector<256x128xf32> -> vector<256x128xf32>
    %c0_27 = arith.constant 0 : index
    %c0_28 = arith.constant 0 : index
    %31 = vector.load %arg11[%c0_27, %c0_28] : memref<1x128xf32, #tpu.memory_space<vmem>>, vector<1x128xf32>
    %32 = vector.broadcast %31 : vector<1x128xf32> to vector<256x128xf32>
    %33 = arith.addf %30, %32 : vector<256x128xf32>
    %34 = arith.negf %33 : vector<256x128xf32>
    %35 = math.exp %34 : vector<256x128xf32>
    %cst_29 = arith.constant 1.000000e+00 : f32
    %36 = vector.broadcast %cst_29 : f32 to vector<256x128xf32>
    %37 = arith.addf %36, %35 : vector<256x128xf32>
    %38 = arith.divf %36, %37 : vector<256x128xf32>
    %c0_30 = arith.constant 0 : index
    %c0_31 = arith.constant 0 : index
    %39 = vector.load %arg12[%c0_30, %c0_31] : memref<256x128xf32, #tpu.memory_space<vmem>>, vector<256x128xf32>
    tpu.vector_store %arg12[%c0_30, %c0_31], %38 {strides = array<i32>} : memref<256x128xf32, #tpu.memory_space<vmem>>, vector<256x128xf32>,
    return
  }
  func.func @transform_0(%arg0: i32) -> (i32, i32) {
    %c0_i32 = arith.constant 0 : i32
    %c0_i32_0 = arith.constant 0 : i32
    return %arg0, %c0_i32 : i32, i32
  }
  func.func @transform_1(%arg0: i32) -> (i32, i32) {
    %c0_i32 = arith.constant 0 : i32
    %c0_i32_0 = arith.constant 0 : i32
    %c0_i32_1 = arith.constant 0 : i32
    return %c0_i32, %c0_i32_0 : i32, i32
  }
  func.func @transform_2(%arg0: i32) -> (i32, i32) {
    %c0_i32 = arith.constant 0 : i32
    %c0_i32_0 = arith.constant 0 : i32
    %c0_i32_1 = arith.constant 0 : i32
    return %c0_i32, %c0_i32_0 : i32, i32
  }
  func.func @transform_3(%arg0: i32) -> (i32, i32) {
    %c0_i32 = arith.constant 0 : i32
    %c0_i32_0 = arith.constant 0 : i32
    %c0_i32_1 = arith.constant 0 : i32
    return %c0_i32, %c0_i32_0 : i32, i32
  }
  func.func @transform_4(%arg0: i32) -> (i32, i32) {
    %c0_i32 = arith.constant 0 : i32
    %c0_i32_0 = arith.constant 0 : i32
    %c0_i32_1 = arith.constant 0 : i32
    return %c0_i32, %c0_i32_0 : i32, i32
  }
  func.func @transform_5(%arg0: i32) -> (i32, i32) {
    %c0_i32 = arith.constant 0 : i32
    %c0_i32_0 = arith.constant 0 : i32
    %c0_i32_1 = arith.constant 0 : i32
    return %c0_i32, %c0_i32_0 : i32, i32
  }
  func.func @transform_6(%arg0: i32) -> (i32, i32) {
    %c0_i32 = arith.constant 0 : i32
    %c0_i32_0 = arith.constant 0 : i32
    %c0_i32_1 = arith.constant 0 : i32
    return %c0_i32, %c0_i32_0 : i32, i32
  }
  func.func @transform_7(%arg0: i32) -> (i32, i32) {
    %c0_i32 = arith.constant 0 : i32
    %c0_i32_0 = arith.constant 0 : i32
    %c0_i32_1 = arith.constant 0 : i32
    return %c0_i32, %c0_i32_0 : i32, i32
  }
  func.func @transform_8(%arg0: i32) -> (i32, i32) {
    %c0_i32 = arith.constant 0 : i32
    %c0_i32_0 = arith.constant 0 : i32
    %c0_i32_1 = arith.constant 0 : i32
    return %c0_i32, %c0_i32_0 : i32, i32
  }
  func.func @transform_9(%arg0: i32) -> (i32, i32) {
    %c0_i32 = arith.constant 0 : i32
    %c0_i32_0 = arith.constant 0 : i32
    %c0_i32_1 = arith.constant 0 : i32
    return %c0_i32, %c0_i32_0 : i32, i32
  }
  func.func @transform_10(%arg0: i32) -> (i32, i32) {
    %c0_i32 = arith.constant 0 : i32
    %c0_i32_0 = arith.constant 0 : i32
    %c0_i32_1 = arith.constant 0 : i32
    return %c0_i32, %c0_i32_0 : i32, i32
  }
  func.func @transform_11(%arg0: i32) -> (i32, i32) {
    %c0_i32 = arith.constant 0 : i32
    %c0_i32_0 = arith.constant 0 : i32
    return %arg0, %c0_i32 : i32, i32
  }
}

</mosaic_0001>

<bundles_post_ra>
// kernel: tpu_custom_call.1
= control target key start
LH: loop header
LB: loop body
LE: loop exit
PB: predicated region body
PF: predicated region fallthrough
CT: control target
= control target key end

     0   :  { %16 = vsyncpa [#allocation3], 0  ;;  %s3554_s0 = inlined_call_operand.hbm [shape: f32[512,128], index: 0, kind: input, shape index: {}]   ;;  %s3555_s1 = inlined_call_operand.vmem [shape: f32[128,64], index: 1, kind: input, shape index: {}]   ;;  %s3556_s2 = inlined_call_operand.vmem [shape: f32[1,64], index: 2, kind: input, shape index: {}]   ;;  %s3557_s3 = inlined_call_operand.vmem [shape: f32[64,32], index: 3, kind: input, shape index: {}]   ;;  %s3558_s4 = inlined_call_operand.vmem [shape: f32[1,32], index: 4, kind: input, shape index: {}]   ;;  %s3559_s5 = inlined_call_operand.vmem [shape: f32[32,32], index: 5, kind: input, shape index: {}]   ;;  %s3560_s6 = inlined_call_operand.vmem [shape: f32[1,32], index: 6, kind: input, shape index: {}]   ;;  %s3561_s7 = inlined_call_operand.vmem [shape: f32[32,64], index: 7, kind: input, shape index: {}]   ;;  %s3562_s8 = inlined_call_operand.vmem [shape: f32[1,64], index: 8, kind: input, shape index: {}]   ;;  %s3563_s9 = inlined_call_operand.vmem [shape: f32[64,128], index: 9, kind: input, shape index: {}]   ;;  %s3564_s10 = inlined_call_operand.vmem [shape: f32[1,128], index: 10, kind: input, shape index: {}]   ;;  %s3565_s11 = inlined_call_operand.hbm [shape: f32[512,128], index: 11, kind: output, shape index: {}]  }
   0x1   :  { %18 = vsyncpa [#allocation3 + $0x1], 0 }
   0x2   :  { %19 = vsyncpa [#allocation4], 0 }
   0x3   :  { %21 = vsyncpa [#allocation4 + $0x1], 0  ;;  %s2847_s17 = smov 0   ;;  %s2849_s18 = smov 0  }
   0x4   :  { %s2851_s19 = smov 0   ;;  %s2853_s20 = smov 0  }
   0x5 LB: > { %3571 = sst [smem:[#allocation8_spill]] %s2769_s17  ;;  %s2868_s21 = sadd.s32 4294967295, %s2781_s20   ;;  %s2781_s20 = sphi %s2853_s20, %s3584_s20   ;;  %s2777_s19 = sphi %s2851_s19, %s3586_s19   ;;  %s2773_s18 = sphi %s2849_s18, %s3588_s18   ;;  %s2769_s17 = sphi %s2847_s17, %s3587_s17  }
   0x6   : > { %3572 = sst [smem:[#allocation9_spill]] %s2777_s19  ;;  %s2309_s22 = sadd.s32 4294967294, %s2781_s20  }
   0x7   : > { %s2872_s23 = sadd.s32 1, %s2781_s20   ;;  %s34_s24 = sadd.s32 1, %s2777_s19 }
   0x8   : > { %3573 = sst [smem:[#allocation10_spill]] %s2872_s23  ;;  %s31_s25 = ssub.s32 %s2781_s20, %s2872_s23 }
   0x9   : > { %p41_p0 = scmp.ne.s32.totalorder %s2777_s19, %s2773_s18  ;;  %p32_p1 = scmp.eq.s32.totalorder %s31_s25, 0 }
   0xa   : > { %p42_p2 = scmp.eq.s32.totalorder %s2781_s20, 0  ;;  %p47_p3 = scmp.ne.s32.totalorder %s2773_s18, %s2769_s17 }
   0xb   : > { %p48_p4 = scmp.eq.s32.totalorder %s2868_s21, 0  ;;  %p281_p7 = scmp.eq.s32.totalorder %s2868_s21, 1 }
   0xc   : > { %s2884_s26 = scalar_select %p32_p1, %s2777_s19, %s34_s24  }
   0xd   : > { %p2886_p5 = por %p42_p2, %p41_p0  ;;  %p2890_p6 = por %p48_p4, %p47_p3 }
   0xe   : > { %3574 = sst [smem:[#allocation11_spill]] %s2884_s26  ;;  %p287_p8 = scmp.eq.s32.totalorder %s2309_s22, 1 }
   0xf   : > { %p2513_p10 = scmp.lt.s32.totalorder %s2781_s20, 2  ;;  %p2897_p11 = por %p281_p7, %p41_p0 }
  0x10   : > { %p2901_p12 = por %p287_p8, %p47_p3  ;;  %s337_s12 = sand.u32 1, %s2777_s19  }
  0x11   : > { %s2483_s13 = sshll.u32 %s2781_s20, 8  ;;  %s2312_s14 = sshll.u32 %s337_s12, 8 }
  0x12   : > { %s3578_s30 = scalar_select %p2901_p12, 1, 0 }
  0x13   : > { %s346_s24 = scalar_lea.hbm %s3554_s0, %s2483_s13  ;;  %s341_s22 = scalar_lea.vmem [#allocation2], %s2312_s14 }
  0x14   : > { %3579 = sst [smem:[#allocation12_spill]] %s3578_s30  ;;  %s347_s25 = sshll.u32 %s346_s24, 4  ;;  %s348_s25 = int_to_ptr.hbm [resolvable:$true] %s347_s25 }
  0x15   : > { %s349_s26 = sshll.u32 %s341_s22, 4  ;;  %p2912_p13 = pnand %p2513_p10, %p2886_p5  ;;  %s350_s26 = int_to_ptr.vmem [resolvable:$true] %s349_s26 }
  0x16   : > { %p2315_p0 = scmp.ge.s32.totalorder %s2781_s20, 1  ;;  %p357_p1 = scmp.lt.s32.totalorder %s2781_s20, 3 }
  0x17   : > { %s338_s19 = scalar_lea.sflag [#allocation3], %s337_s12  ;;  %s2685_s30 = sshra.s32 %s348_s25, 4  ;;  %s2686_s30 = int_to_ptr.hbm [resolvable:$true] %s2685_s30 }
  0x18   : > { %s2687_s17 = scalar_lea.hbm %s2686_s30, 256  ;;  %p2689_p3 = pneg %p2912_p13 }
  0x19   : > { %p2688_p2 = scmp.ne.s32.totalorder %s2686_s30, %s2687_s17  ;;  %s2692_s27 = scalar_lea.hbm %s3554_s0, 512 }
  0x1a   : > { %p2693_p5 = scmp.lt.s32.totalorder %s2686_s30, %s3554_s0  ;;  %p2694_p8 = scmp.lt.s32.totalorder %s2692_s27, %s2687_s17 }
  0x1b   : > { %p2690_p4 = pnand %p2689_p3, %p2688_p2 }
  0x1c   : > { %p2695_p10 = por %p2694_p8, %p2693_p5 }
  0x1d   : > { %p2691_p7 = pneg %p2690_p4 }
  0x1f   : > { %p2696_p9 = pnand %p2695_p10, %p2691_p7 }
  0x21   : > { %2699 = shalt.err (!%p2696_p9)
}
  0x22   : > { %s2783_s12 = smov 128   ;;  %s2784_s24 = smov 8  }
  0x23   : > { %2508 = dma.hbm_to_vmem [thread:$0]  (!%p2912_p13), %s348_s25, 4096, %s350_s26, %s338_s19, %s2783_s12, %s2783_s12, %s2784_s24  }
  0x24   : > { %p358_p2 = pnand %p2315_p0, %p357_p1 }
  0x25   : > { %s2933_s22 = sand.u32 (!%p358_p2), 1, %s2773_s18  }
  0x26   : > { %361 = sbr.rel (%p358_p2) target bundleno = 1142 (0x476), region = 64  ;;  %s2316_s17 = sshll.u32 (!%p358_p2), %s2933_s22, 8 }
  0x27   : > { %s364_s30 = scalar_lea.sflag (!%p358_p2), [#allocation3], %s2933_s22  ;;  %s2939_s13 = scalar_lea.vmem (!%p358_p2), [#allocation2], %s2316_s17 }
  0x2b   : > { %2760 = dma.done.wait (%p2890_p6), %s364_s30, 4096  }
  0x2c   : > { %2762 = vsyncadd (%p2890_p6), %s364_s30, 4294963200  ;;  %v456_v0 = vld [vmem:[%s3555_s1 + $0x78] sm:$0xff]  ;;  %v455_v1 = vld [vmem:[%s3555_s1 + $0x70] sm:$0xff]  ;;  %vm618_vm0 = vcmask 523264   ;;  %vm868_vm1 = vcmask 261120   ;;  %s3431_s25 = scalar_lea.vmem [#allocation5], %s2316_s17 }
  0x2d   : > { %461 = vmatpush.msra.mxu0 %v456_v0  ;;  %v454_v2 = vld [vmem:[%s3555_s1 + $0x68] sm:$0xff]  ;;  %v453_v3 = vld [vmem:[%s3555_s1 + $0x60] sm:$0xff]  ;;  %v613_v4 = vld [vmem:[%s3557_s3 + $0x38] sm:$0xff]  ;;  %s2484_s27 = sshll.u32 %s2868_s21, 8  ;;  %s2233_s21 = sshll.u32 %s3431_s25, 4  ;;  %s2234_s21 = int_to_ptr.vmem [resolvable:$true] %s2233_s21 }
  0x2e   : > { %v452_v5 = vld [vmem:[%s3555_s1 + $0x58] sm:$0xff]  ;;  %2485 = vmatpush.msra.mxu1 %v613_v4  ;;  %v451_v6 = vld [vmem:[%s3555_s1 + $0x50] sm:$0xff]  ;;  %v450_v7 = vld [vmem:[%s3555_s1 + $0x48] sm:$0xff]  ;;  %s2221_s12 = scalar_lea.sflag [#allocation4], %s2933_s22  ;;  %s2735_s26 = scalar_lea.hbm %s3565_s11, 512 }
  0x2f   : > { %462 = vmatpush.msra.mxu0 %v455_v1  ;;  %v449_v8 = vld [vmem:[%s3555_s1 + $0x40] sm:$0xff]  ;;  %v448_v9 = vld [vmem:[%s3555_s1 + $0x38] sm:$0xff]  ;;  %v447_v10 = vld [vmem:[%s3555_s1 + $0x30] sm:$0xff] }
  0x30   : > { %v446_v11 = vld [vmem:[%s3555_s1 + $0x28] sm:$0xff]  ;;  %v445_v12 = vld [vmem:[%s3555_s1 + $0x20] sm:$0xff]  ;;  %v444_v13 = vld [vmem:[%s3555_s1 + $0x18] sm:$0xff] }
  0x31   : > { %463 = vmatpush.msra.mxu0 %v454_v2  ;;  %v443_v14 = vld [vmem:[%s3555_s1 + $0x10] sm:$0xff]  ;;  %v442_v15 = vld [vmem:[%s3555_s1 + $0x8] sm:$0xff]  ;;  %v441_v16 = vld [vmem:[%s3555_s1] sm:$0xff] }
  0x32   : > { %v409_v17 = vld [vmem:[%s2939_s13] sm:$0xff]  ;;  %v612_v18 = vld [vmem:[%s3557_s3 + $0x30] sm:$0xff]  ;;  %v410_v19 = vld [vmem:[%s2939_s13 + $0x8] sm:$0xff] }
  0x33   : > { %464 = vmatpush.msra.mxu0 %v453_v3  ;;  %2486 = vmatpush.msra.mxu1 %v612_v18  ;;  %v411_v20 = vld [vmem:[%s2939_s13 + $0x10] sm:$0xff]  ;;  %v412_v21 = vld [vmem:[%s2939_s13 + $0x18] sm:$0xff]  ;;  %v413_v22 = vld [vmem:[%s2939_s13 + $0x20] sm:$0xff] }
  0x34   : > { %v611_v23 = vld [vmem:[%s3557_s3 + $0x28] sm:$0xff]  ;;  %v415_v25 = vld [vmem:[%s2939_s13 + $0x30] sm:$0xff]  ;;  %v416_v26 = vld [vmem:[%s2939_s13 + $0x38] sm:$0xff] }
  0x35   : > { %465 = vmatpush.msra.mxu0 %v452_v5  ;;  %2487 = vmatpush.msra.mxu1 %v611_v23  ;;  %v414_v24 = vld [vmem:[%s2939_s13 + $0x28] sm:$0xff]  ;;  %v417_v27 = vld [vmem:[%s2939_s13 + $0x40] sm:$0xff]  ;;  %v419_v30 = vld [vmem:[%s2939_s13 + $0x50] sm:$0xff] }
  0x36   : > { %v610_v28 = vld [vmem:[%s3557_s3 + $0x20] sm:$0xff]  ;;  %v418_v29 = vld [vmem:[%s2939_s13 + $0x48] sm:$0xff]  ;;  %v420_v31 = vld [vmem:[%s2939_s13 + $0x58] sm:$0xff] }
  0x37   : > { %466 = vmatpush.msra.mxu0 %v451_v6  ;;  %2488 = vmatpush.msra.mxu1 %v610_v28  ;;  %v421_v32 = vld [vmem:[%s2939_s13 + $0x60] sm:$0xff]  ;;  %v609_v33 = vld [vmem:[%s3557_s3 + $0x18] sm:$0xff]  ;;  %v422_v34 = vld [vmem:[%s2939_s13 + $0x68] sm:$0xff] }
  0x38   : > { %v423_v35 = vld [vmem:[%s2939_s13 + $0x70] sm:$0xff]  ;;  %v424_v36 = vld [vmem:[%s2939_s13 + $0x78] sm:$0xff]  ;;  %v425_v38 = vld [vmem:[%s2939_s13 + $0x80] sm:$0xff] }
  0x39   : > { %467 = vmatpush.msra.mxu0 %v450_v7  ;;  %2489 = vmatpush.msra.mxu1 %v609_v33  ;;  %v608_v39 = vld [vmem:[%s3557_s3 + $0x10] sm:$0xff]  ;;  %v426_v41 = vld [vmem:[%s2939_s13 + $0x88] sm:$0xff]  ;;  %v606_v45 = vld [vmem:[%s3557_s3] sm:$0xff] }
  0x3a   : > { %v427_v43 = vld [vmem:[%s2939_s13 + $0x90] sm:$0xff]  ;;  %v607_v44 = vld [vmem:[%s3557_s3 + $0x8] sm:$0xff]  ;;  %v863_v46 = vld [vmem:[%s3559_s5 + $0x18] sm:$0xff] }
  0x3b   : > { %468 = vmatpush.msra.mxu0 %v449_v8  ;;  %2490 = vmatpush.msra.mxu1 %v608_v39  ;;  %v428_v48 = vld [vmem:[%s2939_s13 + $0x98] sm:$0xff]  ;;  %v429_v50 = vld [vmem:[%s2939_s13 + $0xa0] sm:$0xff]  ;;  %v430_v52 = vld [vmem:[%s2939_s13 + $0xa8] sm:$0xff] }
  0x3c   : > { %2493 = vmatpush.msra.mxu2 %v863_v46  ;;  %2494 = vmatpush.msra.mxu3 %v863_v46  ;;  %v3057_v53 = vld [vmem:[%s3556_s2] ss:$0 sm:$0xff]  ;;  %v431_v55 = vld [vmem:[%s2939_s13 + $0xb0] sm:$0xff]  ;;  %v432_v59 = vld [vmem:[%s2939_s13 + $0xb8] sm:$0xff] }
  0x3d   : > { %469 = vmatpush.msra.mxu0 %v448_v9  ;;  %2491 = vmatpush.msra.mxu1 %v607_v44  ;;  %v433_v63 = vld [vmem:[%s2939_s13 + $0xc0] sm:$0xff]  ;;  %v434_v3 = vld [vmem:[%s2939_s13 + $0xc8] sm:$0xff]  ;;  %v862_v6 = vld [vmem:[%s3559_s5 + $0x10] sm:$0xff] }
  0x3e   : > { %2495 = vmatpush.msra.mxu2 %v862_v6  ;;  %2496 = vmatpush.msra.mxu3 %v862_v6  ;;  %v435_v8 = vld [vmem:[%s2939_s13 + $0xd0] sm:$0xff] }
  0x3f   : > { %470 = vmatpush.msra.mxu0 %v447_v10  ;;  %2492 = vmatpush.msra.mxu1 %v606_v45 }
  0x41   : > { %471 = vmatpush.msra.mxu0 %v446_v11  ;;  %977 = vmatpush.msrb.mxu1 %v863_v46 }
  0x43   : > { %472 = vmatpush.msra.mxu0 %v445_v12  ;;  %978 = vmatpush.msrb.mxu1 %v862_v6  ;;  %v436_v12 = vld [vmem:[%s2939_s13 + $0xd8] sm:$0xff] }
  0x45   : > { %473 = vmatpush.msra.mxu0 %v444_v13 }
  0x47   : > { %474 = vmatpush.msra.mxu0 %v443_v14 }
  0x49   : > { %475 = vmatpush.msra.mxu0 %v442_v15 }
  0x4b   : > { %476 = vmatpush.msra.mxu0 %v441_v16  ;;  %v437_v16 = vld [vmem:[%s2939_s13 + $0xe0] sm:$0xff] }
  0x4c   : > { %477 = vmatmul.f32.vlgmr.msra.gmra.mxu0 %v409_v17 }
  0x4d   : > { %723 = vmatpush.msrb.mxu0 %v613_v4 }
  0x4f   : > { %724 = vmatpush.msrb.mxu0 %v612_v18 }
  0x51   : > { %725 = vmatpush.msrb.mxu0 %v611_v23 }
  0x53   : > { %726 = vmatpush.msrb.mxu0 %v610_v28  ;;  %v440_v28 = vld [vmem:[%s2939_s13 + $0xf8] sm:$0xff] }
  0x54   : > { %480 = vmatmul.f32.gmra.mxu0 %v410_v19 }
  0x55   : > { %727 = vmatpush.msrb.mxu0 %v609_v33 }
  0x57   : > { %728 = vmatpush.msrb.mxu0 %v608_v39 }
  0x59   : > { %729 = vmatpush.msrb.mxu0 %v607_v44 }
  0x5b   : > { %730 = vmatpush.msrb.mxu0 %v606_v45 }
  0x5c   : > { %483 = vmatmul.f32.gmra.mxu0 %v411_v20  ;;  %v438_v20 = vld [vmem:[%s2939_s13 + $0xe8] sm:$0xff] }
  0x64   : > { %486 = vmatmul.f32.gmra.mxu0 %v412_v21 }
  0x6c   : > { %489 = vmatmul.f32.gmra.mxu0 %v413_v22 }
  0x74   : > { %492 = vmatmul.f32.gmra.mxu0 %v414_v24  ;;  %v439_v24 = vld [vmem:[%s2939_s13 + $0xf0] sm:$0xff]  ;;  %s2232_s13 = scalar_lea.hbm %s3565_s11, %s2484_s27 }
  0x75   : > { %s2235_s28 = sshll.u32 %s2232_s13, 4  ;;  %s2236_s28 = int_to_ptr.hbm [resolvable:$true] %s2235_s28 }
  0x76   : > { %s2729_s24 = sshra.s32 %s2236_s28, 4  ;;  %s2730_s24 = int_to_ptr.hbm [resolvable:$true] %s2729_s24 }
  0x77   : > { %s2731_s30 = scalar_lea.hbm %s2730_s24, 256  ;;  %p2736_p0 = scmp.lt.s32.totalorder %s2730_s24, %s3565_s11 }
  0x78   : > { %p2732_p6 = scmp.ne.s32.totalorder %s2730_s24, %s2731_s30  ;;  %p2737_p1 = scmp.lt.s32.totalorder %s2735_s26, %s2731_s30 }
  0x7a   : > { %p2733_p9 = pnand %p2732_p6, %p2897_p11  ;;  %p2738_p3 = por %p2737_p1, %p2736_p0 }
  0x7c   : > { %495 = vmatmul.f32.gmra.mxu0 %v415_v25  ;;  %p2734_p13 = pneg %p2733_p9 }
  0x7e   : > { %p2739_p4 = pnand %p2738_p3, %p2734_p13 }
  0x84   : > { %498 = vmatmul.f32.gmra.mxu0 %v416_v26 }
  0x8c   : > { %501 = vmatmul.f32.gmra.mxu0 %v417_v27 }
  0x94   : > { %504 = vmatmul.f32.gmra.mxu0 %v418_v29 }
  0x9c   : > { %507 = vmatmul.f32.gmra.mxu0 %v419_v30 }
  0xa4   : > { %510 = vmatmul.f32.gmra.mxu0 %v420_v31 }
  0xac   : > { %513 = vmatmul.f32.gmra.mxu0 %v421_v32  ;;  %v861_v32 = vld [vmem:[%s3559_s5 + $0x8] sm:$0xff] }
  0xad   : > { %979 = vmatpush.msrb.mxu1 %v861_v32  ;;  %2497 = vmatpush.msra.mxu2 %v861_v32 }
  0xae   : > { %2498 = vmatpush.msra.mxu3 %v861_v32 }
  0xb4   : > { %516 = vmatmul.f32.gmra.mxu0 %v422_v34 }
  0xbc   : > { %519 = vmatmul.f32.gmra.mxu0 %v423_v35 }
  0xc4   : > { %522 = vmatmul.f32.gmra.mxu0 %v424_v36 }
  0xc9   : > { %v3024_v37 = vpop.f32.mrf.mxu0 }
  0xca   : > { %v479_v31 = vadd.f32 %v3057_v53, %v3024_v37 }
  0xcc   : > { %525 = vmatmul.f32.gmra.mxu0 %v425_v38  ;;  %v574_v34 = vmax.f32 %v479_v31, 0.0 }
  0xd1   : > { %v3030_v40 = vpop.f32.mrf.mxu0 }
  0xd2   : > { %v482_v38 = vadd.f32 %v3057_v53, %v3030_v40 }
  0xd4   : > { %528 = vmatmul.f32.gmra.mxu0 %v426_v41  ;;  %v575_v39 = vmax.f32 %v482_v38, 0.0 }
  0xd9   : > { %v3033_v42 = vpop.f32.mrf.mxu0 }
  0xda   : > { %v485_v44 = vadd.f32 %v3057_v53, %v3033_v42 }
  0xdc   : > { %531 = vmatmul.f32.gmra.mxu0 %v427_v43  ;;  %v576_v46 = vmax.f32 %v485_v44, 0.0 }
  0xe1   : > { %v3045_v47 = vpop.f32.mrf.mxu0 }
  0xe2   : > { %v488_v40 = vadd.f32 %v3057_v53, %v3045_v47 }
  0xe4   : > { %534 = vmatmul.f32.gmra.mxu0 %v428_v48 }
  0xe9   : > { %v3048_v49 = vpop.f32.mrf.mxu0 }
  0xea   : > { %v491_v42 = vadd.f32 %v3057_v53, %v3048_v49 }
  0xec   : > { %537 = vmatmul.f32.gmra.mxu0 %v429_v50 }
  0xf1   : > { %v3051_v51 = vpop.f32.mrf.mxu0 }
  0xf2   : > { %v494_v47 = vadd.f32 %v3057_v53, %v3051_v51  ;;  %v860_v51 = vld [vmem:[%s3559_s5] sm:$0xff] }
  0xf3   : > { %980 = vmatpush.msrb.mxu1 %v860_v51  ;;  %2499 = vmatpush.msra.mxu2 %v860_v51 }
  0xf4   : > { %540 = vmatmul.f32.gmra.mxu0 %v430_v52  ;;  %2500 = vmatpush.msra.mxu3 %v860_v51 }
  0xf9   : > { %v496_v54 = vpop.f32.mrf.mxu0 }
  0xfa   : > { %v497_v56 = vadd.f32 %v3057_v53, %v496_v54  ;;  %v577_v54 = vmax.f32 %v488_v40, 0.0 }
  0xfc   : > { %v580_v57 = vmax.f32 %v497_v56, 0.0  ;;  %543 = vmatmul.f32.gmra.mxu0 %v431_v55 }
  0xfe   : > { %2324 = vmatmul.msk.f32.vlgmr.msra.gmra.mxu1 %vm618_vm0, %v580_v57 }
 0x101   : > { %v499_v58 = vpop.f32.mrf.mxu0 }
 0x102   : > { %v500_v60 = vadd.f32 %v3057_v53, %v499_v58  ;;  %v578_v58 = vmax.f32 %v491_v42, 0.0 }
 0x104   : > { %v581_v61 = vmax.f32 %v500_v60, 0.0  ;;  %546 = vmatmul.f32.gmra.mxu0 %v432_v59 }
 0x106   : > { %2325 = vmatmul.msk.f32.gmra.mxu1 %vm618_vm0, %v581_v61 }
 0x109   : > { %v502_v62 = vpop.f32.mrf.mxu0 }
 0x10a   : > { %v503_v0 = vadd.f32 %v3057_v53, %v502_v62  ;;  %v579_v62 = vmax.f32 %v494_v47, 0.0 }
 0x10c   : > { %v582_v1 = vmax.f32 %v503_v0, 0.0  ;;  %549 = vmatmul.f32.gmra.mxu0 %v433_v63 }
 0x10e   : > { %2326 = vmatmul.msk.f32.gmra.mxu1 %vm618_vm0, %v582_v1 }
 0x111   : > { %v505_v2 = vpop.f32.mrf.mxu0 }
 0x112   : > { %v506_v4 = vadd.f32 %v3057_v53, %v505_v2 }
 0x114   : > { %v583_v5 = vmax.f32 %v506_v4, 0.0  ;;  %552 = vmatmul.f32.gmra.mxu0 %v434_v3 }
 0x116   : > { %2327 = vmatmul.msk.f32.gmra.mxu1 %vm618_vm0, %v583_v5 }
 0x119   : > { %v508_v7 = vpop.f32.mrf.mxu0 }
 0x11a   : > { %v509_v9 = vadd.f32 %v3057_v53, %v508_v7 }
 0x11c   : > { %v584_v10 = vmax.f32 %v509_v9, 0.0  ;;  %555 = vmatmul.f32.gmra.mxu0 %v435_v8 }
 0x11e   : > { %2328 = vmatmul.msk.f32.gmra.mxu1 %vm618_vm0, %v584_v10 }
 0x121   : > { %v511_v11 = vpop.f32.mrf.mxu0 }
 0x122   : > { %v512_v13 = vadd.f32 %v3057_v53, %v511_v11 }
 0x124   : > { %v585_v14 = vmax.f32 %v512_v13, 0.0  ;;  %558 = vmatmul.f32.gmra.mxu0 %v436_v12 }
 0x126   : > { %2329 = vmatmul.msk.f32.gmra.mxu1 %vm618_vm0, %v585_v14 }
 0x129   : > { %v514_v15 = vpop.f32.mrf.mxu0 }
 0x12a   : > { %v515_v17 = vadd.f32 %v3057_v53, %v514_v15 }
 0x12c   : > { %v586_v18 = vmax.f32 %v515_v17, 0.0  ;;  %561 = vmatmul.f32.gmra.mxu0 %v437_v16 }
 0x12e   : > { %2330 = vmatmul.msk.f32.gmra.mxu1 %vm618_vm0, %v586_v18 }
 0x131   : > { %v517_v19 = vpop.f32.mrf.mxu0 }
 0x132   : > { %v518_v21 = vadd.f32 %v3057_v53, %v517_v19 }
 0x134   : > { %v587_v22 = vmax.f32 %v518_v21, 0.0  ;;  %564 = vmatmul.f32.gmra.mxu0 %v438_v20 }
 0x136   : > { %2331 = vmatmul.msk.f32.gmra.mxu1 %vm618_vm0, %v587_v22 }
 0x139   : > { %v520_v23 = vpop.f32.mrf.mxu0 }
 0x13a   : > { %v521_v25 = vadd.f32 %v3057_v53, %v520_v23 }
 0x13c   : > { %v588_v26 = vmax.f32 %v521_v25, 0.0  ;;  %567 = vmatmul.f32.gmra.mxu0 %v439_v24 }
 0x13e   : > { %2332 = vmatmul.msk.f32.gmra.mxu1 %vm618_vm0, %v588_v26 }
 0x141   : > { %v523_v27 = vpop.f32.mrf.mxu0 }
 0x142   : > { %v524_v29 = vadd.f32 %v3057_v53, %v523_v27 }
 0x144   : > { %v589_v30 = vmax.f32 %v524_v29, 0.0  ;;  %570 = vmatmul.f32.gmra.mxu0 %v440_v28 }
 0x146   : > { %2333 = vmatmul.msk.f32.gmra.mxu1 %vm618_vm0, %v589_v30 }
 0x149   : > { %v526_v33 = vpop.f32.mrf.mxu0 }
 0x14a   : > { %v527_v35 = vadd.f32 %v3057_v53, %v526_v33  ;;  %v3163_v33 = vld [vmem:[%s3558_s4] ss:$0 sm:$0xff] }
 0x14c   : > { %v590_v36 = vmax.f32 %v527_v35, 0.0  ;;  %2318 = vmatmul.msk.f32.vlgmr.msrb.gmra.mxu0 %vm618_vm0, %v574_v34 }
 0x14e   : > { %2334 = vmatmul.msk.f32.gmra.mxu1 %vm618_vm0, %v590_v36 }
 0x151   : > { %v529_v37 = vpop.f32.mrf.mxu0 }
 0x152   : > { %v530_v41 = vadd.f32 %v3057_v53, %v529_v37 }
 0x154   : > { %v591_v43 = vmax.f32 %v530_v41, 0.0  ;;  %2319 = vmatmul.msk.f32.gmra.mxu0 %vm618_vm0, %v575_v39 }
 0x156   : > { %2335 = vmatmul.msk.f32.gmra.mxu1 %vm618_vm0, %v591_v43 }
 0x159   : > { %v532_v45 = vpop.f32.mrf.mxu0 }
 0x15a   : > { %v533_v48 = vadd.f32 %v3057_v53, %v532_v45 }
 0x15c   : > { %v592_v50 = vmax.f32 %v533_v48, 0.0  ;;  %2320 = vmatmul.msk.f32.gmra.mxu0 %vm618_vm0, %v576_v46 }
 0x15e   : > { %2336 = vmatmul.msk.f32.gmra.mxu1 %vm618_vm0, %v592_v50 }
 0x161   : > { %v535_v52 = vpop.f32.mrf.mxu0 }
 0x162   : > { %v536_v55 = vadd.f32 %v3057_v53, %v535_v52 }
 0x164   : > { %v593_v56 = vmax.f32 %v536_v55, 0.0  ;;  %2321 = vmatmul.msk.f32.gmra.mxu0 %vm618_vm0, %v577_v54 }
 0x166   : > { %2337 = vmatmul.msk.f32.gmra.mxu1 %vm618_vm0, %v593_v56 }
 0x169   : > { %v538_v57 = vpop.f32.mrf.mxu0 }
 0x16a   : > { %v539_v59 = vadd.f32 %v3057_v53, %v538_v57 }
 0x16c   : > { %v594_v60 = vmax.f32 %v539_v59, 0.0  ;;  %2322 = vmatmul.msk.f32.gmra.mxu0 %vm618_vm0, %v578_v58 }
 0x16e   : > { %2338 = vmatmul.msk.f32.gmra.mxu1 %vm618_vm0, %v594_v60 }
 0x171   : > { %v541_v61 = vpop.f32.mrf.mxu0 }
 0x172   : > { %v542_v63 = vadd.f32 %v3057_v53, %v541_v61 }
 0x174   : > { %v595_v0 = vmax.f32 %v542_v63, 0.0  ;;  %2323 = vmatmul.msk.f32.gmra.mxu0 %vm618_vm0, %v579_v62 }
 0x176   : > { %2339 = vmatmul.msk.f32.gmra.mxu1 %vm618_vm0, %v595_v0 }
 0x179   : > { %v544_v49 = vpop.f32.mrf.mxu0 }
 0x17a   : > { %v545_v1 = vadd.f32 %v3057_v53, %v544_v49 }
 0x17b   : > { %v3126_v2 = vpop.f32.mrf.mxu1 }
 0x17c   : > { %v596_v3 = vmax.f32 %v545_v1, 0.0 }
 0x17e   : > { %2340 = vmatmul.msk.f32.gmra.mxu1 %vm618_vm0, %v596_v3 }
 0x181   : > { %v547_v4 = vpop.f32.mrf.mxu0 }
 0x182   : > { %v548_v5 = vadd.f32 %v3057_v53, %v547_v4 }
 0x183   : > { %v3133_v6 = vpop.f32.mrf.mxu1 }
 0x184   : > { %v597_v7 = vmax.f32 %v548_v5, 0.0 }
 0x186   : > { %2341 = vmatmul.msk.f32.gmra.mxu1 %vm618_vm0, %v597_v7  ;;  %v1113_v7 = vld [vmem:[%s3561_s7 + $0x18] sm:$0xff] }
 0x187   : > { %1226 = vmatpush.msrb.mxu3 %v1113_v7 }
 0x189   : > { %v550_v8 = vpop.f32.mrf.mxu0 }
 0x18a   : > { %v551_v9 = vadd.f32 %v3057_v53, %v550_v8 }
 0x18b   : > { %v3137_v10 = vpop.f32.mrf.mxu1 }
 0x18c   : > { %v598_v11 = vmax.f32 %v551_v9, 0.0 }
 0x18e   : > { %2342 = vmatmul.msk.f32.gmra.mxu1 %vm618_vm0, %v598_v11 }
 0x191   : > { %v553_v12 = vpop.f32.mrf.mxu0 }
 0x192   : > { %v554_v13 = vadd.f32 %v3057_v53, %v553_v12 }
 0x193   : > { %v3141_v14 = vpop.f32.mrf.mxu1 }
 0x194   : > { %v599_v15 = vmax.f32 %v554_v13, 0.0 }
 0x196   : > { %2343 = vmatmul.msk.f32.gmra.mxu1 %vm618_vm0, %v599_v15 }
 0x199   : > { %v556_v16 = vpop.f32.mrf.mxu0 }
 0x19a   : > { %v557_v17 = vadd.f32 %v3057_v53, %v556_v16 }
 0x19b   : > { %v3145_v18 = vpop.f32.mrf.mxu1 }
 0x19c   : > { %v600_v19 = vmax.f32 %v557_v17, 0.0 }
 0x19e   : > { %2344 = vmatmul.msk.f32.gmra.mxu1 %vm618_vm0, %v600_v19 }
 0x1a1   : > { %v559_v20 = vpop.f32.mrf.mxu0 }
 0x1a2   : > { %v560_v21 = vadd.f32 %v3057_v53, %v559_v20 }
 0x1a3   : > { %v3149_v22 = vpop.f32.mrf.mxu1 }
 0x1a4   : > { %v601_v23 = vmax.f32 %v560_v21, 0.0 }
 0x1a6   : > { %2345 = vmatmul.msk.f32.gmra.mxu1 %vm618_vm0, %v601_v23 }
 0x1a9   : > { %v562_v24 = vpop.f32.mrf.mxu0 }
 0x1aa   : > { %v563_v25 = vadd.f32 %v3057_v53, %v562_v24  ;;  %v751_v24 = vadd.f32 %v3163_v33, %v3126_v2 }
 0x1ab   : > { %v3153_v26 = vpop.f32.mrf.mxu1 }
 0x1ac   : > { %v602_v27 = vmax.f32 %v563_v25, 0.0  ;;  %v1112_v25 = vld [vmem:[%s3561_s7 + $0x10] sm:$0xff] }
 0x1ad   : > { %1227 = vmatpush.msrb.mxu3 %v1112_v25  ;;  %v1366_v25 = vld [vmem:[%s3563_s9 + $0x38] sm:$0xff] }
 0x1ae   : > { %2346 = vmatmul.msk.f32.gmra.mxu1 %vm618_vm0, %v602_v27  ;;  %1475 = vmatpush.msrb.mxu2 %v1366_v25 }
 0x1b1   : > { %v565_v28 = vpop.f32.mrf.mxu0 }
 0x1b2   : > { %v566_v29 = vadd.f32 %v3057_v53, %v565_v28  ;;  %v834_v28 = vmax.f32 %v751_v24, 0.0 }
 0x1b3   : > { %v3157_v30 = vpop.f32.mrf.mxu1 }
 0x1b4   : > { %v603_v31 = vmax.f32 %v566_v29, 0.0 }
 0x1b6   : > { %2347 = vmatmul.msk.f32.gmra.mxu1 %vm618_vm0, %v603_v31 }
 0x1b9   : > { %v568_v32 = vpop.f32.mrf.mxu0 }
 0x1ba   : > { %v569_v34 = vadd.f32 %v3057_v53, %v568_v32  ;;  %v754_v32 = vadd.f32 %v3163_v33, %v3133_v6  ;;  %v1111_v6 = vld [vmem:[%s3561_s7 + $0x8] sm:$0xff] }
 0x1bb   : > { %v774_v35 = vpop.f32.mrf.mxu1  ;;  %1228 = vmatpush.msrb.mxu3 %v1111_v6 }
 0x1bc   : > { %v604_v36 = vmax.f32 %v569_v34, 0.0  ;;  %v775_v38 = vadd.f32 %v3163_v33, %v774_v35  ;;  %v835_v34 = vmax.f32 %v754_v32, 0.0 }
 0x1be   : > { %v842_v37 = vmax.f32 %v775_v38, 0.0  ;;  %2348 = vmatmul.msk.f32.gmra.mxu1 %vm618_vm0, %v604_v36  ;;  %v757_v38 = vadd.f32 %v3163_v33, %v3137_v10 }
 0x1c0   : > { %2364 = vmatmul.msk.f32.vlgmr.msra.gmra.mxu2 %vm868_vm1, %v842_v37 }
 0x1c1   : > { %v571_v39 = vpop.f32.mrf.mxu0 }
 0x1c2   : > { %v572_v41 = vadd.f32 %v3057_v53, %v571_v39  ;;  %v836_v39 = vmax.f32 %v757_v38, 0.0 }
 0x1c3   : > { %v777_v43 = vpop.f32.mrf.mxu1 }
 0x1c4   : > { %v605_v44 = vmax.f32 %v572_v41, 0.0  ;;  %v778_v45 = vadd.f32 %v3163_v33, %v777_v43 }
 0x1c6   : > { %v843_v46 = vmax.f32 %v778_v45, 0.0  ;;  %2349 = vmatmul.msk.f32.gmra.mxu1 %vm618_vm0, %v605_v44  ;;  %v760_v44 = vadd.f32 %v3163_v33, %v3141_v14  ;;  %v1110_v14 = vld [vmem:[%s3561_s7] sm:$0xff] }
 0x1c7   : > { %1229 = vmatpush.msrb.mxu3 %v1110_v14  ;;  %v1361_v14 = vld [vmem:[%s3563_s9 + $0x10] sm:$0xff] }
 0x1c8   : > { %2365 = vmatmul.msk.f32.gmra.mxu2 %vm868_vm1, %v843_v46  ;;  %v837_v45 = vmax.f32 %v760_v44, 0.0  ;;  %v1363_v44 = vld [vmem:[%s3563_s9 + $0x20] sm:$0xff] }
 0x1c9   : > { %v732_v48 = vpop.f32.mrf.mxu0 }
 0x1ca   : > { %v733_v50 = vadd.f32 %v3163_v33, %v732_v48 }
 0x1cb   : > { %v780_v40 = vpop.f32.mrf.mxu1 }
 0x1cc   : > { %v828_v52 = vmax.f32 %v733_v50, 0.0  ;;  %v781_v54 = vadd.f32 %v3163_v33, %v780_v40  ;;  %v763_v50 = vadd.f32 %v3163_v33, %v3145_v18 }
 0x1ce   : > { %v844_v55 = vmax.f32 %v781_v54, 0.0  ;;  %2350 = vmatmul.msk.f32.vlgmr.msrb.gmra.mxu1 %vm868_vm1, %v828_v52  ;;  %v838_v52 = vmax.f32 %v763_v50, 0.0  ;;  %v1362_v50 = vld [vmem:[%s3563_s9 + $0x18] sm:$0xff] }
 0x1d0   : > { %2366 = vmatmul.msk.f32.gmra.mxu2 %vm868_vm1, %v844_v55 }
 0x1d1   : > { %v735_v53 = vpop.f32.mrf.mxu0 }
 0x1d2   : > { %v736_v56 = vadd.f32 %v3163_v33, %v735_v53  ;;  %v766_v53 = vadd.f32 %v3163_v33, %v3149_v22  ;;  %v772_v22 = vadd.f32 %v3163_v33, %v3157_v30 }
 0x1d3   : > { %v783_v42 = vpop.f32.mrf.mxu1 }
 0x1d4   : > { %v829_v57 = vmax.f32 %v736_v56, 0.0  ;;  %v784_v58 = vadd.f32 %v3163_v33, %v783_v42  ;;  %v839_v56 = vmax.f32 %v766_v53, 0.0 }
 0x1d6   : > { %v845_v59 = vmax.f32 %v784_v58, 0.0  ;;  %2351 = vmatmul.msk.f32.gmra.mxu1 %vm868_vm1, %v829_v57  ;;  %v769_v58 = vadd.f32 %v3163_v33, %v3153_v26 }
 0x1d8   : > { %2367 = vmatmul.msk.f32.gmra.mxu2 %vm868_vm1, %v845_v59 }
 0x1d9   : > { %v738_v60 = vpop.f32.mrf.mxu0 }
 0x1da   : > { %v739_v47 = vadd.f32 %v3163_v33, %v738_v60  ;;  %v840_v60 = vmax.f32 %v769_v58, 0.0 }
 0x1db   : > { %v786_v61 = vpop.f32.mrf.mxu1 }
 0x1dc   : > { %v830_v62 = vmax.f32 %v739_v47, 0.0  ;;  %v787_v63 = vadd.f32 %v3163_v33, %v786_v61 }
 0x1de   : > { %v846_v0 = vmax.f32 %v787_v63, 0.0  ;;  %2352 = vmatmul.msk.f32.gmra.mxu1 %vm868_vm1, %v830_v62  ;;  %v841_v63 = vmax.f32 %v772_v22, 0.0  ;;  %v1359_v22 = vld [vmem:[%s3563_s9] sm:$0xff] }
 0x1e0   : > { %2368 = vmatmul.msk.f32.gmra.mxu2 %vm868_vm1, %v846_v0 }
 0x1e1   : > { %v741_v49 = vpop.f32.mrf.mxu0 }
 0x1e2   : > { %v742_v1 = vadd.f32 %v3163_v33, %v741_v49 }
 0x1e3   : > { %v789_v3 = vpop.f32.mrf.mxu1 }
 0x1e4   : > { %v831_v51 = vmax.f32 %v742_v1, 0.0  ;;  %v790_v4 = vadd.f32 %v3163_v33, %v789_v3 }
 0x1e6   : > { %v847_v5 = vmax.f32 %v790_v4, 0.0  ;;  %2353 = vmatmul.msk.f32.gmra.mxu1 %vm868_vm1, %v831_v51 }
 0x1e8   : > { %2369 = vmatmul.msk.f32.gmra.mxu2 %vm868_vm1, %v847_v5  ;;  %v3256_v5 = vld [vmem:[%s3560_s6] ss:$0 sm:$0xff] }
 0x1e9   : > { %v744_v8 = vpop.f32.mrf.mxu0 }
 0x1ea   : > { %v745_v9 = vadd.f32 %v3163_v33, %v744_v8 }
 0x1eb   : > { %v792_v11 = vpop.f32.mrf.mxu1 }
 0x1ec   : > { %v832_v12 = vmax.f32 %v745_v9, 0.0  ;;  %v793_v13 = vadd.f32 %v3163_v33, %v792_v11 }
 0x1ee   : > { %v848_v15 = vmax.f32 %v793_v13, 0.0  ;;  %2354 = vmatmul.msk.f32.gmra.mxu1 %vm868_vm1, %v832_v12 }
 0x1f0   : > { %2370 = vmatmul.msk.f32.gmra.mxu2 %vm868_vm1, %v848_v15 }
 0x1f1   : > { %v747_v16 = vpop.f32.mrf.mxu0 }
 0x1f2   : > { %v748_v17 = vadd.f32 %v3163_v33, %v747_v16 }
 0x1f3   : > { %v795_v19 = vpop.f32.mrf.mxu1 }
 0x1f4   : > { %v833_v20 = vmax.f32 %v748_v17, 0.0  ;;  %v796_v21 = vadd.f32 %v3163_v33, %v795_v19 }
 0x1f6   : > { %v849_v23 = vmax.f32 %v796_v21, 0.0  ;;  %2355 = vmatmul.msk.f32.gmra.mxu1 %vm868_vm1, %v833_v20 }
 0x1f8   : > { %2371 = vmatmul.msk.f32.gmra.mxu2 %vm868_vm1, %v849_v23 }
 0x1fb   : > { %v798_v27 = vpop.f32.mrf.mxu1 }
 0x1fc   : > { %v799_v29 = vadd.f32 %v3163_v33, %v798_v27 }
 0x1fe   : > { %v850_v31 = vmax.f32 %v799_v29, 0.0  ;;  %2356 = vmatmul.msk.f32.gmra.mxu1 %vm868_vm1, %v834_v28 }
 0x200   : > { %2372 = vmatmul.msk.f32.gmra.mxu2 %vm868_vm1, %v850_v31  ;;  %v1365_v31 = vld [vmem:[%s3563_s9 + $0x30] sm:$0xff] }
 0x201   : > { %1476 = vmatpush.msrb.mxu2 %v1365_v31 }
 0x203   : > { %v801_v2 = vpop.f32.mrf.mxu1 }
 0x204   : > { %v802_v35 = vadd.f32 %v3163_v33, %v801_v2 }
 0x206   : > { %v851_v36 = vmax.f32 %v802_v35, 0.0  ;;  %2357 = vmatmul.msk.f32.gmra.mxu1 %vm868_vm1, %v835_v34  ;;  %v1364_v35 = vld [vmem:[%s3563_s9 + $0x28] sm:$0xff] }
 0x207   : > { %1477 = vmatpush.msrb.mxu2 %v1364_v35 }
 0x208   : > { %2373 = vmatmul.msk.f32.vlgmr.msra.gmra.mxu3 %vm868_vm1, %v851_v36 }
 0x209   : > { %1478 = vmatpush.msrb.mxu2 %v1363_v44 }
 0x20b   : > { %v804_v37 = vpop.f32.mrf.mxu1  ;;  %1479 = vmatpush.msrb.mxu2 %v1362_v50 }
 0x20c   : > { %v805_v41 = vadd.f32 %v3163_v33, %v804_v37 }
 0x20d   : > { %1480 = vmatpush.msrb.mxu2 %v1361_v14 }
 0x20e   : > { %v852_v43 = vmax.f32 %v805_v41, 0.0  ;;  %2358 = vmatmul.msk.f32.gmra.mxu1 %vm868_vm1, %v836_v39 }
 0x210   : > { %2374 = vmatmul.msk.f32.gmra.mxu3 %vm868_vm1, %v852_v43 }
 0x213   : > { %v807_v10 = vpop.f32.mrf.mxu1 }
 0x214   : > { %v808_v46 = vadd.f32 %v3163_v33, %v807_v10 }
 0x216   : > { %v853_v48 = vmax.f32 %v808_v46, 0.0  ;;  %2359 = vmatmul.msk.f32.gmra.mxu1 %vm868_vm1, %v837_v45 }
 0x218   : > { %2375 = vmatmul.msk.f32.gmra.mxu3 %vm868_vm1, %v853_v48 }
 0x21b   : > { %v810_v40 = vpop.f32.mrf.mxu1 }
 0x21c   : > { %v811_v54 = vadd.f32 %v3163_v33, %v810_v40 }
 0x21e   : > { %v854_v55 = vmax.f32 %v811_v54, 0.0  ;;  %2360 = vmatmul.msk.f32.gmra.mxu1 %vm868_vm1, %v838_v52 }
 0x220   : > { %2376 = vmatmul.msk.f32.gmra.mxu3 %vm868_vm1, %v854_v55 }
 0x223   : > { %v813_v18 = vpop.f32.mrf.mxu1 }
 0x224   : > { %v814_v42 = vadd.f32 %v3163_v33, %v813_v18 }
 0x226   : > { %v855_v57 = vmax.f32 %v814_v42, 0.0  ;;  %2361 = vmatmul.msk.f32.gmra.mxu1 %vm868_vm1, %v839_v56 }
 0x228   : > { %2377 = vmatmul.msk.f32.gmra.mxu3 %vm868_vm1, %v855_v57  ;;  %v1360_v57 = vld [vmem:[%s3563_s9 + $0x8] sm:$0xff] }
 0x229   : > { %1481 = vmatpush.msrb.mxu2 %v1360_v57 }
 0x22b   : > { %v816_v59 = vpop.f32.mrf.mxu1  ;;  %1482 = vmatpush.msrb.mxu2 %v1359_v22 }
 0x22c   : > { %v817_v47 = vadd.f32 %v3163_v33, %v816_v59 }
 0x22e   : > { %v856_v61 = vmax.f32 %v817_v47, 0.0  ;;  %2362 = vmatmul.msk.f32.gmra.mxu1 %vm868_vm1, %v840_v60 }
 0x230   : > { %2378 = vmatmul.msk.f32.gmra.mxu3 %vm868_vm1, %v856_v61 }
 0x233   : > { %v819_v62 = vpop.f32.mrf.mxu1 }
 0x234   : > { %v820_v0 = vadd.f32 %v3163_v33, %v819_v62 }
 0x236   : > { %v857_v49 = vmax.f32 %v820_v0, 0.0  ;;  %2363 = vmatmul.msk.f32.gmra.mxu1 %vm868_vm1, %v841_v63 }
 0x238   : > { %2379 = vmatmul.msk.f32.gmra.mxu3 %vm868_vm1, %v857_v49 }
 0x23b   : > { %v822_v26 = vpop.f32.mrf.mxu1 }
 0x23c   : > { %v823_v1 = vadd.f32 %v3163_v33, %v822_v26 }
 0x23e   : > { %v858_v3 = vmax.f32 %v823_v1, 0.0 }
 0x240   : > { %2380 = vmatmul.msk.f32.gmra.mxu3 %vm868_vm1, %v858_v3 }
 0x243   : > { %v825_v51 = vpop.f32.mrf.mxu1  ;;  %v1024_v58 = vpop.f32.mrf.mxu2 }
 0x244   : > { %v826_v30 = vadd.f32 %v3163_v33, %v825_v51  ;;  %v1025_v1 = vadd.f32 %v3256_v5, %v1024_v58 }
 0x246   : > { %v859_v4 = vmax.f32 %v826_v30, 0.0  ;;  %v1092_v30 = vmax.f32 %v1025_v1, 0.0 }
 0x248   : > { %2381 = vmatmul.msk.f32.gmra.mxu3 %vm868_vm1, %v859_v4 }
 0x24b   : > { %v982_v7 = vpop.f32.mrf.mxu1  ;;  %v1027_v62 = vpop.f32.mrf.mxu2 }
 0x24c   : > { %v983_v8 = vadd.f32 %v3256_v5, %v982_v7  ;;  %v1028_v4 = vadd.f32 %v3256_v5, %v1027_v62 }
 0x24e   : > { %v1078_v9 = vmax.f32 %v983_v8, 0.0 }
 0x250   : > { %2382 = vmatmul.msk.f32.vlgmr.msrb.gmra.mxu3 %vm868_vm1, %v1078_v9  ;;  %v1093_v9 = vmax.f32 %v1028_v4, 0.0 }
 0x253   : > { %v985_v11 = vpop.f32.mrf.mxu1  ;;  %v1030_v3 = vpop.f32.mrf.mxu2 }
 0x254   : > { %v986_v12 = vadd.f32 %v3256_v5, %v985_v11  ;;  %v1031_v11 = vadd.f32 %v3256_v5, %v1030_v3 }
 0x256   : > { %v1079_v13 = vmax.f32 %v986_v12, 0.0 }
 0x258   : > { %2383 = vmatmul.msk.f32.gmra.mxu3 %vm868_vm1, %v1079_v13  ;;  %v1094_v13 = vmax.f32 %v1031_v11, 0.0 }
 0x25b   : > { %v988_v33 = vpop.f32.mrf.mxu1  ;;  %v1033_v8 = vpop.f32.mrf.mxu2 }
 0x25c   : > { %v989_v15 = vadd.f32 %v3256_v5, %v988_v33 }
 0x25e   : > { %v1080_v16 = vmax.f32 %v989_v15, 0.0  ;;  %v3337_v15 = vld [vmem:[%s3562_s8] ss:$0 sm:$0xff] }
 0x260   : > { %2384 = vmatmul.msk.f32.gmra.mxu3 %vm868_vm1, %v1080_v16  ;;  %v1034_v16 = vadd.f32 %v3256_v5, %v1033_v8 }
 0x263   : > { %v991_v17 = vpop.f32.mrf.mxu1  ;;  %v1036_v33 = vpop.f32.mrf.mxu2 }
 0x264   : > { %v992_v19 = vadd.f32 %v3256_v5, %v991_v17 }
 0x266   : > { %v1081_v20 = vmax.f32 %v992_v19, 0.0 }
 0x268   : > { %2385 = vmatmul.msk.f32.gmra.mxu3 %vm868_vm1, %v1081_v20  ;;  %v1095_v20 = vmax.f32 %v1034_v16, 0.0 }
 0x26b   : > { %v994_v21 = vpop.f32.mrf.mxu1 }
 0x26c   : > { %v995_v23 = vadd.f32 %v3256_v5, %v994_v21 }
 0x26e   : > { %v1082_v24 = vmax.f32 %v995_v23, 0.0  ;;  %v1039_v23 = vpop.f32.mrf.mxu2 }
 0x26f   : > { %v1040_v31 = vadd.f32 %v3256_v5, %v1039_v23 }
 0x270   : > { %2386 = vmatmul.msk.f32.gmra.mxu3 %vm868_vm1, %v1082_v24  ;;  %v1037_v24 = vadd.f32 %v3256_v5, %v1036_v33 }
 0x271   : > { %v1097_v35 = vmax.f32 %v1040_v31, 0.0 }
 0x273   : > { %v997_v27 = vpop.f32.mrf.mxu1 }
 0x274   : > { %v998_v28 = vadd.f32 %v3256_v5, %v997_v27 }
 0x276   : > { %v1083_v29 = vmax.f32 %v998_v28, 0.0  ;;  %v1096_v28 = vmax.f32 %v1037_v24, 0.0 }
 0x278   : > { %2387 = vmatmul.msk.f32.gmra.mxu3 %vm868_vm1, %v1083_v29 }
 0x27b   : > { %v1000_v32 = vpop.f32.mrf.mxu1 }
 0x27c   : > { %v1001_v2 = vadd.f32 %v3256_v5, %v1000_v32  ;;  %v1042_v32 = vpop.f32.mrf.mxu2 }
 0x27e   : > { %v1084_v34 = vmax.f32 %v1001_v2, 0.0 }
 0x280   : > { %2388 = vmatmul.msk.f32.gmra.mxu3 %vm868_vm1, %v1084_v34 }
 0x283   : > { %v1003_v36 = vpop.f32.mrf.mxu1 }
 0x284   : > { %v1004_v38 = vadd.f32 %v3256_v5, %v1003_v36 }
 0x286   : > { %v1085_v37 = vmax.f32 %v1004_v38, 0.0  ;;  %v1043_v38 = vadd.f32 %v3256_v5, %v1042_v32 }
 0x288   : > { %2389 = vmatmul.msk.f32.gmra.mxu3 %vm868_vm1, %v1085_v37 }
 0x28b   : > { %v1006_v39 = vpop.f32.mrf.mxu1  ;;  %v3283_v41 = vpop.f32.mrf.mxu3 }
 0x28c   : > { %v1007_v43 = vadd.f32 %v3256_v5, %v1006_v39  ;;  %v1052_v57 = vadd.f32 %v3256_v5, %v3283_v41 }
 0x28e   : > { %v1086_v6 = vmax.f32 %v1007_v43, 0.0  ;;  %v1045_v43 = vpop.f32.mrf.mxu2 }
 0x290   : > { %2390 = vmatmul.msk.f32.gmra.mxu3 %vm868_vm1, %v1086_v6  ;;  %v1098_v6 = vmax.f32 %v1043_v38, 0.0 }
 0x293   : > { %v1009_v10 = vpop.f32.mrf.mxu1  ;;  %v3290_v45 = vpop.f32.mrf.mxu3 }
 0x294   : > { %v1010_v46 = vadd.f32 %v3256_v5, %v1009_v10  ;;  %v1046_v10 = vadd.f32 %v3256_v5, %v1045_v43  ;;  %v1055_v22 = vadd.f32 %v3256_v5, %v3290_v45 }
 0x296   : > { %v1087_v48 = vmax.f32 %v1010_v46, 0.0  ;;  %v1099_v50 = vmax.f32 %v1046_v10, 0.0 }
 0x298   : > { %2391 = vmatmul.msk.f32.gmra.mxu3 %vm868_vm1, %v1087_v48 }
 0x29b   : > { %v1012_v40 = vpop.f32.mrf.mxu1  ;;  %v3297_v52 = vpop.f32.mrf.mxu3 }
 0x29c   : > { %v1013_v54 = vadd.f32 %v3256_v5, %v1012_v40  ;;  %v1058_v41 = vadd.f32 %v3256_v5, %v3297_v52 }
 0x29e   : > { %v1088_v55 = vmax.f32 %v1013_v54, 0.0  ;;  %v1048_v54 = vpop.f32.mrf.mxu2 }
 0x2a0   : > { %2392 = vmatmul.msk.f32.gmra.mxu3 %vm868_vm1, %v1088_v55  ;;  %v1049_v55 = vadd.f32 %v3256_v5, %v1048_v54 }
 0x2a3   : > { %v1015_v53 = vpop.f32.mrf.mxu1  ;;  %v3304_v18 = vpop.f32.mrf.mxu3 }
 0x2a4   : > { %v1016_v56 = vadd.f32 %v3256_v5, %v1015_v53  ;;  %v1061_v45 = vadd.f32 %v3256_v5, %v3304_v18 }
 0x2a6   : > { %v1089_v42 = vmax.f32 %v1016_v56, 0.0  ;;  %v1100_v56 = vmax.f32 %v1049_v55, 0.0  ;;  %v1104_v11 = vmax.f32 %v1061_v45, 0.0 }
 0x2a8   : > { %2393 = vmatmul.msk.f32.gmra.mxu3 %vm868_vm1, %v1089_v42 }
 0x2ab   : > { %v1018_v59 = vpop.f32.mrf.mxu1  ;;  %v3311_v60 = vpop.f32.mrf.mxu3 }
 0x2ac   : > { %v1019_v47 = vadd.f32 %v3256_v5, %v1018_v59  ;;  %v1064_v52 = vadd.f32 %v3256_v5, %v3311_v60 }
 0x2ae   : > { %v1090_v61 = vmax.f32 %v1019_v47, 0.0  ;;  %v1101_v47 = vmax.f32 %v1052_v57, 0.0 }
 0x2b0   : > { %2394 = vmatmul.msk.f32.gmra.mxu3 %vm868_vm1, %v1090_v61 }
 0x2b3   : > { %v1021_v63 = vpop.f32.mrf.mxu1  ;;  %v3318_v0 = vpop.f32.mrf.mxu3 }
 0x2b4   : > { %v1022_v49 = vadd.f32 %v3256_v5, %v1021_v63  ;;  %v1067_v18 = vadd.f32 %v3256_v5, %v3318_v0 }
 0x2b6   : > { %v1091_v26 = vmax.f32 %v1022_v49, 0.0  ;;  %v1102_v49 = vmax.f32 %v1055_v22, 0.0  ;;  %v1106_v23 = vmax.f32 %v1067_v18, 0.0 }
 0x2b8   : > { %2395 = vmatmul.msk.f32.gmra.mxu3 %vm868_vm1, %v1091_v26 }
 0x2bb   : > { %v3323_v51 = vpop.f32.mrf.mxu3 }
 0x2bc   : > { %v1070_v60 = vadd.f32 %v3256_v5, %v3323_v51 }
 0x2c0   : > { %2396 = vmatmul.msk.f32.gmra.mxu3 %vm868_vm1, %v1092_v30  ;;  %v1103_v30 = vmax.f32 %v1058_v41, 0.0 }
 0x2c3   : > { %v3327_v7 = vpop.f32.mrf.mxu3 }
 0x2c4   : > { %v1073_v0 = vadd.f32 %v3256_v5, %v3327_v7 }
 0x2c8   : > { %2397 = vmatmul.msk.f32.gmra.mxu3 %vm868_vm1, %v1093_v9 }
 0x2cb   : > { %v3331_v12 = vpop.f32.mrf.mxu3 }
 0x2cc   : > { %v1076_v51 = vadd.f32 %v3256_v5, %v3331_v12  ;;  %v3415_v5 = vld [vmem:[%s3564_s10] ss:$0 sm:$0xff] }
 0x2ce   : > { %v1109_v38 = vmax.f32 %v1076_v51, 0.0 }
 0x2d0   : > { %2398 = vmatmul.msk.f32.gmra.mxu3 %vm868_vm1, %v1094_v13 }
 0x2d3   : > { %v1231_v17 = vpop.f32.mrf.mxu3 }
 0x2d4   : > { %v1232_v19 = vadd.f32 %v3337_v15, %v1231_v17  ;;  %v1105_v17 = vmax.f32 %v1064_v52, 0.0 }
 0x2d6   : > { %v1327_v21 = vmax.f32 %v1232_v19, 0.0 }
 0x2d8   : > { %2399 = vmatmul.msk.f32.gmra.mxu3 %vm868_vm1, %v1095_v20  ;;  %2414 = vmatmul.msk.f32.vlgmr.msrb.gmra.mxu2 %vm618_vm0, %v1327_v21 }
 0x2db   : > { %v1234_v25 = vpop.f32.mrf.mxu3 }
 0x2dc   : > { %v1235_v27 = vadd.f32 %v3337_v15, %v1234_v25 }
 0x2de   : > { %v1328_v29 = vmax.f32 %v1235_v27, 0.0 }
 0x2e0   : > { %2400 = vmatmul.msk.f32.gmra.mxu3 %vm868_vm1, %v1096_v28  ;;  %2415 = vmatmul.msk.f32.gmra.mxu2 %vm618_vm0, %v1328_v29  ;;  %v1107_v28 = vmax.f32 %v1070_v60, 0.0 }
 0x2e3   : > { %v1237_v2 = vpop.f32.mrf.mxu3 }
 0x2e4   : > { %v1238_v34 = vadd.f32 %v3337_v15, %v1237_v2  ;;  %v1108_v2 = vmax.f32 %v1073_v0, 0.0 }
 0x2e6   : > { %v1329_v36 = vmax.f32 %v1238_v34, 0.0 }
 0x2e8   : > { %2401 = vmatmul.msk.f32.gmra.mxu3 %vm868_vm1, %v1097_v35  ;;  %2416 = vmatmul.msk.f32.gmra.mxu2 %vm618_vm0, %v1329_v36 }
 0x2eb   : > { %v1240_v37 = vpop.f32.mrf.mxu3 }
 0x2ec   : > { %v1241_v39 = vadd.f32 %v3337_v15, %v1240_v37 }
 0x2ee   : > { %v1330_v44 = vmax.f32 %v1241_v39, 0.0 }
 0x2f0   : > { %2402 = vmatmul.msk.f32.gmra.mxu3 %vm868_vm1, %v1098_v6  ;;  %2417 = vmatmul.msk.f32.gmra.mxu2 %vm618_vm0, %v1330_v44 }
 0x2f3   : > { %v1243_v46 = vpop.f32.mrf.mxu3 }
 0x2f4   : > { %v1244_v48 = vadd.f32 %v3337_v15, %v1243_v46 }
 0x2f6   : > { %v1331_v40 = vmax.f32 %v1244_v48, 0.0 }
 0x2f8   : > { %2403 = vmatmul.msk.f32.gmra.mxu3 %vm868_vm1, %v1099_v50  ;;  %2418 = vmatmul.msk.f32.gmra.mxu2 %vm618_vm0, %v1331_v40 }
 0x2fb   : > { %v1246_v14 = vpop.f32.mrf.mxu3 }
 0x2fc   : > { %v1247_v53 = vadd.f32 %v3337_v15, %v1246_v14 }
 0x2fe   : > { %v1332_v42 = vmax.f32 %v1247_v53, 0.0 }
 0x300   : > { %2404 = vmatmul.msk.f32.gmra.mxu3 %vm868_vm1, %v1100_v56  ;;  %2419 = vmatmul.msk.f32.gmra.mxu2 %vm618_vm0, %v1332_v42 }
 0x303   : > { %v1249_v58 = vpop.f32.mrf.mxu3 }
 0x304   : > { %v1250_v59 = vadd.f32 %v3337_v15, %v1249_v58 }
 0x306   : > { %v1333_v61 = vmax.f32 %v1250_v59, 0.0 }
 0x308   : > { %2405 = vmatmul.msk.f32.gmra.mxu3 %vm868_vm1, %v1101_v47  ;;  %2420 = vmatmul.msk.f32.gmra.mxu2 %vm618_vm0, %v1333_v61 }
 0x30b   : > { %v1252_v62 = vpop.f32.mrf.mxu3 }
 0x30c   : > { %v1253_v63 = vadd.f32 %v3337_v15, %v1252_v62 }
 0x30e   : > { %v1334_v26 = vmax.f32 %v1253_v63, 0.0 }
 0x310   : > { %2406 = vmatmul.msk.f32.gmra.mxu3 %vm868_vm1, %v1102_v49  ;;  %2421 = vmatmul.msk.f32.gmra.mxu2 %vm618_vm0, %v1334_v26 }
 0x313   : > { %v1255_v1 = vpop.f32.mrf.mxu3 }
 0x314   : > { %v1256_v3 = vadd.f32 %v3337_v15, %v1255_v1 }
 0x316   : > { %v1335_v4 = vmax.f32 %v1256_v3, 0.0 }
 0x318   : > { %2407 = vmatmul.msk.f32.gmra.mxu3 %vm868_vm1, %v1103_v30  ;;  %2422 = vmatmul.msk.f32.gmra.mxu2 %vm618_vm0, %v1335_v4 }
 0x31b   : > { %v1258_v8 = vpop.f32.mrf.mxu3 }
 0x31c   : > { %v1259_v9 = vadd.f32 %v3337_v15, %v1258_v8 }
 0x31e   : > { %v1336_v13 = vmax.f32 %v1259_v9, 0.0 }
 0x320   : > { %2408 = vmatmul.msk.f32.gmra.mxu3 %vm868_vm1, %v1104_v11  ;;  %2423 = vmatmul.msk.f32.gmra.mxu2 %vm618_vm0, %v1336_v13 }
 0x323   : > { %v1261_v33 = vpop.f32.mrf.mxu3 }
 0x324   : > { %v1262_v16 = vadd.f32 %v3337_v15, %v1261_v33 }
 0x326   : > { %v1337_v19 = vmax.f32 %v1262_v16, 0.0 }
 0x328   : > { %2409 = vmatmul.msk.f32.gmra.mxu3 %vm868_vm1, %v1105_v17  ;;  %2424 = vmatmul.msk.f32.gmra.mxu2 %vm618_vm0, %v1337_v19 }
 0x32b   : > { %v1264_v20 = vpop.f32.mrf.mxu3 }
 0x32c   : > { %v1265_v21 = vadd.f32 %v3337_v15, %v1264_v20 }
 0x32e   : > { %v1338_v24 = vmax.f32 %v1265_v21, 0.0 }
 0x330   : > { %2410 = vmatmul.msk.f32.gmra.mxu3 %vm868_vm1, %v1106_v23  ;;  %2425 = vmatmul.msk.f32.gmra.mxu2 %vm618_vm0, %v1338_v24 }
 0x333   : > { %v1267_v25 = vpop.f32.mrf.mxu3 }
 0x334   : > { %v1268_v27 = vadd.f32 %v3337_v15, %v1267_v25 }
 0x336   : > { %v1339_v29 = vmax.f32 %v1268_v27, 0.0 }
 0x338   : > { %2411 = vmatmul.msk.f32.gmra.mxu3 %vm868_vm1, %v1107_v28  ;;  %2426 = vmatmul.msk.f32.gmra.mxu2 %vm618_vm0, %v1339_v29 }
 0x33b   : > { %v1270_v31 = vpop.f32.mrf.mxu3 }
 0x33c   : > { %v1271_v32 = vadd.f32 %v3337_v15, %v1270_v31 }
 0x33e   : > { %v1340_v34 = vmax.f32 %v1271_v32, 0.0 }
 0x340   : > { %2412 = vmatmul.msk.f32.gmra.mxu3 %vm868_vm1, %v1108_v2  ;;  %2427 = vmatmul.msk.f32.gmra.mxu2 %vm618_vm0, %v1340_v34 }
 0x343   : > { %v1273_v35 = vpop.f32.mrf.mxu3 }
 0x344   : > { %v1274_v36 = vadd.f32 %v3337_v15, %v1273_v35 }
 0x346   : > { %v1341_v37 = vmax.f32 %v1274_v36, 0.0 }
 0x348   : > { %2413 = vmatmul.msk.f32.gmra.mxu3 %vm868_vm1, %v1109_v38  ;;  %2428 = vmatmul.msk.f32.gmra.mxu2 %vm618_vm0, %v1341_v37 }
 0x34b   : > { %v1276_v7 = vpop.f32.mrf.mxu3 }
 0x34c   : > { %v1277_v39 = vadd.f32 %v3337_v15, %v1276_v7 }
 0x34e   : > { %v1342_v43 = vmax.f32 %v1277_v39, 0.0 }
 0x350   : > { %2429 = vmatmul.msk.f32.gmra.mxu2 %vm618_vm0, %v1342_v43 }
 0x353   : > { %v1279_v6 = vpop.f32.mrf.mxu3 }
 0x354   : > { %v1280_v44 = vadd.f32 %v3337_v15, %v1279_v6 }
 0x356   : > { %v1343_v10 = vmax.f32 %v1280_v44, 0.0 }
 0x358   : > { %2430 = vmatmul.msk.f32.gmra.mxu2 %vm618_vm0, %v1343_v10 }
 0x35b   : > { %v1282_v12 = vpop.f32.mrf.mxu3  ;;  %v1484_v46 = vpop.f32.mrf.mxu2 }
 0x35c   : > { %v1283_v48 = vadd.f32 %v3337_v15, %v1282_v12  ;;  %v1485_v50 = vadd.f32 %v3415_v5, %v1484_v46 }
 0x35e   : > { %v1344_v40 = vmax.f32 %v1283_v48, 0.0  ;;  %v2446_v54 = vmul.f32 -1.442695, %v1485_v50 }
 0x360   : > { %2556 = vpow2.f32 %v2446_v54  ;;  %2431 = vmatmul.msk.f32.gmra.mxu2 %vm618_vm0, %v1344_v40 }
 0x363   : > { %v1285_v55 = vpop.f32.mrf.mxu3  ;;  %v1487_v14 = vpop.f32.mrf.mxu2 }
 0x364   : > { %v1286_v53 = vadd.f32 %v3337_v15, %v1285_v55  ;;  %v1488_v56 = vadd.f32 %v3415_v5, %v1487_v14 }
 0x366   : > { %v2557_v42 = vpop.eup %2556  ;;  %v1345_v57 = vmax.f32 %v1286_v53, 0.0  ;;  %v2447_v58 = vmul.f32 -1.442695, %v1488_v56 }
 0x367   : > { %v1676_v59 = vadd.f32 1.0, %v2557_v42 }
 0x368   : > { %2558 = vpow2.f32 %v2447_v58  ;;  %2432 = vmatmul.msk.f32.gmra.mxu2 %vm618_vm0, %v1345_v57 }
 0x369   : > { %2560 = vrcp.f32 %v1676_v59  ;;  %v1717_v4 = vand.u32 2147483647, %v1676_v59  ;;  %v1719_v45 = vand.u32 2147483648, %v1676_v59  ;;  %vm1713_vm3 = vweird.f32 %v1676_v59 }
 0x36b   : > { %v1288_v47 = vpop.f32.mrf.mxu3  ;;  %v1490_v61 = vpop.f32.mrf.mxu2  ;;  %v1720_v20 = vor.u32 1.1754944e-38, %v1719_v45  ;;  %vm1718_vm5 = vcmp.eq.f32.partialorder %v1717_v4, 8.507059e+37 }
 0x36c   : > { %v1289_v22 = vadd.f32 %v3337_v15, %v1288_v47  ;;  %v1491_v62 = vadd.f32 %v3415_v5, %v1490_v61 }
 0x36e   : > { %v2559_v63 = vpop.eup %2558  ;;  %v1346_v49 = vmax.f32 %v1289_v22, 0.0  ;;  %v2448_v26 = vmul.f32 -1.442695, %v1491_v62 }
 0x36f   : > { %v2561_v41 = vpop.eup %2560  ;;  %v1677_v1 = vadd.f32 1.0, %v2559_v63 }
 0x370   : > { %v1709_v3 = vmul.f32 %v2561_v41, %v1676_v59  ;;  %2562 = vpow2.f32 %v2448_v26  ;;  %2433 = vmatmul.msk.f32.gmra.mxu2 %vm618_vm0, %v1346_v49  ;;  %vm1714_vm2 = vweird.f32 %v2561_v41 }
 0x371   : > { %2564 = vrcp.f32 %v1677_v1  ;;  %vm1715_vm4 = vmor %vm1713_vm3, %vm1714_vm2  ;;  %v1732_v27 = vand.u32 2147483647, %v1677_v1  ;;  %v1734_v28 = vand.u32 2147483648, %v1677_v1  ;;  %vm1728_vm7 = vweird.f32 %v1677_v1 }
 0x372   : > { %v1710_v30 = vsub.f32 1.0, %v1709_v3 }
 0x373   : > { %v1291_v8 = vpop.f32.mrf.mxu3  ;;  %v1493_v9 = vpop.f32.mrf.mxu2  ;;  %v1735_v37 = vor.u32 1.1754944e-38, %v1734_v28  ;;  %vm1733_vm9 = vcmp.eq.f32.partialorder %v1732_v27, 8.507059e+37 }
 0x374   : > { %v1711_v11 = vmul.f32 %v2561_v41, %v1710_v30  ;;  %v1292_v13 = vadd.f32 %v3337_v15, %v1291_v8  ;;  %v1494_v52 = vadd.f32 %v3415_v5, %v1493_v9 }
 0x376   : > { %v2563_v33 = vpop.eup %2562  ;;  %v1712_v16 = vadd.f32 %v2561_v41, %v1711_v11  ;;  %v1347_v17 = vmax.f32 %v1292_v13, 0.0  ;;  %v2449_v19 = vmul.f32 -1.442695, %v1494_v52 }
 0x377   : > { %v2565_v18 = vpop.eup %2564  ;;  %v1678_v21 = vadd.f32 1.0, %v2563_v33 }
 0x378   : > { %v1716_v23 = vsel %vm1715_vm4, %v2561_v41, %v1712_v16  ;;  %v1724_v24 = vmul.f32 %v2565_v18, %v1677_v1  ;;  %2566 = vpow2.f32 %v2449_v19  ;;  %2434 = vmatmul.msk.f32.gmra.mxu2 %vm618_vm0, %v1347_v17  ;;  %vm1729_vm6 = vweird.f32 %v2565_v18 }
 0x379   : > { %v1721_v60 = vsel %vm1718_vm5, %v1720_v20, %v1716_v23  ;;  %2568 = vrcp.f32 %v1678_v21  ;;  %vm1730_vm8 = vmor %vm1728_vm7, %vm1729_vm6  ;;  %v1747_v10 = vand.u32 2147483647, %v1678_v21  ;;  %v1749_v12 = vand.u32 2147483648, %v1678_v21 }
 0x37a   : > { %2188 = vst [vmem:[%s3431_s25] sm:$0xff] %v1721_v60  ;;  %v1725_v25 = vsub.f32 1.0, %v1724_v24  ;;  %vm1743_vm11 = vweird.f32 %v1678_v21 }
 0x37b   : > { %v1294_v29 = vpop.f32.mrf.mxu3  ;;  %v1496_v0 = vpop.f32.mrf.mxu2  ;;  %v1750_v57 = vor.u32 1.1754944e-38, %v1749_v12  ;;  %vm1748_vm13 = vcmp.eq.f32.partialorder %v1747_v10, 8.507059e+37 }
 0x37c   : > { %v1726_v31 = vmul.f32 %v2565_v18, %v1725_v25  ;;  %v1295_v32 = vadd.f32 %v3337_v15, %v1294_v29  ;;  %v1497_v2 = vadd.f32 %v3415_v5, %v1496_v0 }
 0x37e   : > { %v2567_v34 = vpop.eup %2566  ;;  %v1727_v51 = vadd.f32 %v2565_v18, %v1726_v31  ;;  %v1348_v35 = vmax.f32 %v1295_v32, 0.0  ;;  %v2450_v36 = vmul.f32 -1.442695, %v1497_v2 }
 0x37f   : > { %v2569_v38 = vpop.eup %2568  ;;  %v1679_v7 = vadd.f32 1.0, %v2567_v34 }
 0x380   : > { %v1731_v39 = vsel %vm1730_vm8, %v2565_v18, %v1727_v51  ;;  %v1739_v43 = vmul.f32 %v2569_v38, %v1678_v21  ;;  %2570 = vpow2.f32 %v2450_v36  ;;  %2435 = vmatmul.msk.f32.gmra.mxu2 %vm618_vm0, %v1348_v35  ;;  %vm1744_vm10 = vweird.f32 %v2569_v38 }
 0x381   : > { %v1736_v6 = vsel %vm1733_vm9, %v1735_v37, %v1731_v39  ;;  %2572 = vrcp.f32 %v1679_v7  ;;  %vm1745_vm12 = vmor %vm1743_vm11, %vm1744_vm10  ;;  %v1762_v62 = vand.u32 2147483647, %v1679_v7  ;;  %v1764_v63 = vand.u32 2147483648, %v1679_v7 }
 0x382   : > { %2189 = vst [vmem:[%s3431_s25 + $0x8] sm:$0xff] %v1736_v6  ;;  %v1740_v44 = vsub.f32 1.0, %v1739_v43  ;;  %vm1758_vm15 = vweird.f32 %v1679_v7 }
 0x383   : > { %v1297_v46 = vpop.f32.mrf.mxu3  ;;  %v1499_v48 = vpop.f32.mrf.mxu2  ;;  %v1765_v11 = vor.u32 1.1754944e-38, %v1764_v63  ;;  %vm1763_vm2 = vcmp.eq.f32.partialorder %v1762_v62, 8.507059e+37 }
 0x384   : > { %v1741_v50 = vmul.f32 %v2569_v38, %v1740_v44  ;;  %v1298_v40 = vadd.f32 %v3337_v15, %v1297_v46  ;;  %v1500_v54 = vadd.f32 %v3415_v5, %v1499_v48 }
 0x386   : > { %v2571_v55 = vpop.eup %2570  ;;  %v1742_v14 = vadd.f32 %v2569_v38, %v1741_v50  ;;  %v1349_v53 = vmax.f32 %v1298_v40, 0.0  ;;  %v2451_v56 = vmul.f32 -1.442695, %v1500_v54 }
 0x387   : > { %v2573_v42 = vpop.eup %2572  ;;  %v1680_v58 = vadd.f32 1.0, %v2571_v55 }
 0x388   : > { %v1746_v59 = vsel %vm1745_vm12, %v2569_v38, %v1742_v14  ;;  %v1754_v47 = vmul.f32 %v2573_v42, %v1679_v7  ;;  %2574 = vpow2.f32 %v2451_v56  ;;  %2436 = vmatmul.msk.f32.gmra.mxu2 %vm618_vm0, %v1349_v53  ;;  %vm1759_vm14 = vweird.f32 %v2573_v42 }
 0x389   : > { %v1751_v61 = vsel %vm1748_vm13, %v1750_v57, %v1746_v59  ;;  %2576 = vrcp.f32 %v1680_v58  ;;  %vm1760_vm1 = vmor %vm1758_vm15, %vm1759_vm14  ;;  %v1777_v19 = vand.u32 2147483647, %v1680_v58  ;;  %v1779_v18 = vand.u32 2147483648, %v1680_v58 }
 0x38a   : > { %2190 = vst [vmem:[%s3431_s25 + $0x10] sm:$0xff] %v1751_v61  ;;  %v1755_v22 = vsub.f32 1.0, %v1754_v47  ;;  %vm1773_vm4 = vweird.f32 %v1680_v58 }
 0x38b   : > { %v1300_v49 = vpop.f32.mrf.mxu3  ;;  %v1502_v26 = vpop.f32.mrf.mxu2  ;;  %v1780_v31 = vor.u32 1.1754944e-38, %v1779_v18  ;;  %vm1778_vm6 = vcmp.eq.f32.partialorder %v1777_v19, 8.507059e+37 }
 0x38c   : > { %v1756_v41 = vmul.f32 %v2573_v42, %v1755_v22  ;;  %v1301_v1 = vadd.f32 %v3337_v15, %v1300_v49  ;;  %v1503_v3 = vadd.f32 %v3415_v5, %v1502_v26 }
 0x38e   : > { %v2575_v30 = vpop.eup %2574  ;;  %v1757_v4 = vadd.f32 %v2573_v42, %v1756_v41  ;;  %v1350_v45 = vmax.f32 %v1301_v1, 0.0  ;;  %v2452_v8 = vmul.f32 -1.442695, %v1503_v3 }
 0x38f   : > { %v2577_v9 = vpop.eup %2576  ;;  %v1681_v13 = vadd.f32 1.0, %v2575_v30 }
 0x390   : > { %v1761_v52 = vsel %vm1760_vm1, %v2573_v42, %v1757_v4  ;;  %v1769_v33 = vmul.f32 %v2577_v9, %v1680_v58  ;;  %2578 = vpow2.f32 %v2452_v8  ;;  %2437 = vmatmul.msk.f32.gmra.mxu2 %vm618_vm0, %v1350_v45  ;;  %vm1774_vm3 = vweird.f32 %v2577_v9 }
 0x391   : > { %v1766_v16 = vsel %vm1763_vm2, %v1765_v11, %v1761_v52  ;;  %2580 = vrcp.f32 %v1681_v13  ;;  %vm1775_vm5 = vmor %vm1773_vm4, %vm1774_vm3  ;;  %v1792_v36 = vand.u32 2147483647, %v1681_v13  ;;  %v1794_v38 = vand.u32 2147483648, %v1681_v13 }
 0x392   : > { %2191 = vst [vmem:[%s3431_s25 + $0x18] sm:$0xff] %v1766_v16  ;;  %v1770_v17 = vsub.f32 1.0, %v1769_v33  ;;  %vm1788_vm8 = vweird.f32 %v1681_v13 }
 0x393   : > { %v1303_v20 = vpop.f32.mrf.mxu3  ;;  %v1505_v21 = vpop.f32.mrf.mxu2  ;;  %v1795_v50 = vor.u32 1.1754944e-38, %v1794_v38  ;;  %vm1793_vm10 = vcmp.eq.f32.partialorder %v1792_v36, 8.507059e+37 }
 0x394   : > { %v1771_v23 = vmul.f32 %v2577_v9, %v1770_v17  ;;  %v1304_v24 = vadd.f32 %v3337_v15, %v1303_v20  ;;  %v1506_v60 = vadd.f32 %v3415_v5, %v1505_v21 }
 0x396   : > { %v2579_v25 = vpop.eup %2578  ;;  %v1772_v27 = vadd.f32 %v2577_v9, %v1771_v23  ;;  %v1351_v28 = vmax.f32 %v1304_v24, 0.0  ;;  %v2453_v29 = vmul.f32 -1.442695, %v1506_v60 }
 0x397   : > { %v2581_v0 = vpop.eup %2580  ;;  %v1682_v32 = vadd.f32 1.0, %v2579_v25 }
 0x398   : > { %v1776_v2 = vsel %vm1775_vm5, %v2577_v9, %v1772_v27  ;;  %v1784_v34 = vmul.f32 %v2581_v0, %v1681_v13  ;;  %2582 = vpow2.f32 %v2453_v29  ;;  %2438 = vmatmul.msk.f32.gmra.mxu2 %vm618_vm0, %v1351_v28  ;;  %vm1789_vm7 = vweird.f32 %v2581_v0 }
 0x399   : > { %v1781_v51 = vsel %vm1778_vm6, %v1780_v31, %v1776_v2  ;;  %2584 = vrcp.f32 %v1682_v32  ;;  %vm1790_vm9 = vmor %vm1788_vm8, %vm1789_vm7  ;;  %v1807_v56 = vand.u32 2147483647, %v1682_v32  ;;  %v1809_v42 = vand.u32 2147483648, %v1682_v32 }
 0x39a   : > { %2192 = vst [vmem:[%s3431_s25 + $0x20] sm:$0xff] %v1781_v51  ;;  %v1785_v35 = vsub.f32 1.0, %v1784_v34  ;;  %vm1803_vm12 = vweird.f32 %v1682_v32 }
 0x39b   : > { %v1306_v37 = vpop.f32.mrf.mxu3  ;;  %v1508_v7 = vpop.f32.mrf.mxu2  ;;  %v1810_v41 = vor.u32 1.1754944e-38, %v1809_v42  ;;  %vm1808_vm14 = vcmp.eq.f32.partialorder %v1807_v56, 8.507059e+37 }
 0x39c   : > { %v1786_v39 = vmul.f32 %v2581_v0, %v1785_v35  ;;  %v1307_v43 = vadd.f32 %v3337_v15, %v1306_v37  ;;  %v1509_v6 = vadd.f32 %v3415_v5, %v1508_v7 }
 0x39e   : > { %v2583_v44 = vpop.eup %2582  ;;  %v1787_v10 = vadd.f32 %v2581_v0, %v1786_v39  ;;  %v1352_v12 = vmax.f32 %v1307_v43, 0.0  ;;  %v2454_v46 = vmul.f32 -1.442695, %v1509_v6 }
 0x39f   : > { %v2585_v48 = vpop.eup %2584  ;;  %v1683_v40 = vadd.f32 1.0, %v2583_v44 }
 0x3a0   : > { %v1791_v54 = vsel %vm1790_vm9, %v2581_v0, %v1787_v10  ;;  %v1799_v55 = vmul.f32 %v2585_v48, %v1682_v32  ;;  %2586 = vpow2.f32 %v2454_v46  ;;  %2439 = vmatmul.msk.f32.gmra.mxu2 %vm618_vm0, %v1352_v12  ;;  %vm1804_vm11 = vweird.f32 %v2585_v48 }
 0x3a1   : > { %v1796_v14 = vsel %vm1793_vm10, %v1795_v50, %v1791_v54  ;;  %2588 = vrcp.f32 %v1683_v40  ;;  %vm1805_vm13 = vmor %vm1803_vm12, %vm1804_vm11  ;;  %v1822_v8 = vand.u32 2147483647, %v1683_v40  ;;  %v1824_v9 = vand.u32 2147483648, %v1683_v40 }
 0x3a2   : > { %2193 = vst [vmem:[%s3431_s25 + $0x28] sm:$0xff] %v1796_v14  ;;  %v1800_v53 = vsub.f32 1.0, %v1799_v55  ;;  %vm1818_vm1 = vweird.f32 %v1683_v40 }
 0x3a3   : > { %v1309_v57 = vpop.f32.mrf.mxu3  ;;  %v1511_v58 = vpop.f32.mrf.mxu2  ;;  %v1825_v23 = vor.u32 1.1754944e-38, %v1824_v9  ;;  %vm1823_vm3 = vcmp.eq.f32.partialorder %v1822_v8, 8.507059e+37 }
 0x3a4   : > { %v1801_v59 = vmul.f32 %v2585_v48, %v1800_v53  ;;  %v1310_v47 = vadd.f32 %v3337_v15, %v1309_v57  ;;  %v1512_v61 = vadd.f32 %v3415_v5, %v1511_v58 }
 0x3a6   : > { %v2587_v22 = vpop.eup %2586  ;;  %v1802_v62 = vadd.f32 %v2585_v48, %v1801_v59  ;;  %v1353_v63 = vmax.f32 %v1310_v47, 0.0  ;;  %v2455_v49 = vmul.f32 -1.442695, %v1512_v61 }
 0x3a7   : > { %v2589_v26 = vpop.eup %2588  ;;  %v1684_v1 = vadd.f32 1.0, %v2587_v22 }
 0x3a8   : > { %v1806_v3 = vsel %vm1805_vm13, %v2585_v48, %v1802_v62  ;;  %v1814_v30 = vmul.f32 %v2589_v26, %v1683_v40  ;;  %2590 = vpow2.f32 %v2455_v49  ;;  %2440 = vmatmul.msk.f32.gmra.mxu2 %vm618_vm0, %v1353_v63  ;;  %vm1819_vm15 = vweird.f32 %v2589_v26 }
 0x3a9   : > { %v1811_v4 = vsel %vm1808_vm14, %v1810_v41, %v1806_v3  ;;  %2592 = vrcp.f32 %v1684_v1  ;;  %vm1820_vm2 = vmor %vm1818_vm1, %vm1819_vm15  ;;  %v1837_v29 = vand.u32 2147483647, %v1684_v1  ;;  %v1839_v0 = vand.u32 2147483648, %v1684_v1 }
 0x3aa   : > { %2194 = vst [vmem:[%s3431_s25 + $0x30] sm:$0xff] %v1811_v4  ;;  %v1815_v45 = vsub.f32 1.0, %v1814_v30  ;;  %vm1833_vm5 = vweird.f32 %v1684_v1 }
 0x3ab   : > { %v1312_v11 = vpop.f32.mrf.mxu3  ;;  %v1514_v13 = vpop.f32.mrf.mxu2  ;;  %v1840_v39 = vor.u32 1.1754944e-38, %v1839_v0  ;;  %vm1838_vm7 = vcmp.eq.f32.partialorder %v1837_v29, 8.507059e+37 }
 0x3ac   : > { %v1816_v52 = vmul.f32 %v2589_v26, %v1815_v45  ;;  %v1313_v33 = vadd.f32 %v3337_v15, %v1312_v11  ;;  %v1515_v16 = vadd.f32 %v3415_v5, %v1514_v13 }
 0x3ae   : > { %v2591_v17 = vpop.eup %2590  ;;  %v1817_v19 = vadd.f32 %v2589_v26, %v1816_v52  ;;  %v1354_v18 = vmax.f32 %v1313_v33, 0.0  ;;  %v2456_v20 = vmul.f32 -1.442695, %v1515_v16 }
 0x3af   : > { %v2593_v21 = vpop.eup %2592  ;;  %v1685_v24 = vadd.f32 1.0, %v2591_v17 }
 0x3b0   : > { %v1821_v60 = vsel %vm1820_vm2, %v2589_v26, %v1817_v19  ;;  %v1829_v25 = vmul.f32 %v2593_v21, %v1684_v1  ;;  %2594 = vpow2.f32 %v2456_v20  ;;  %2441 = vmatmul.msk.f32.gmra.mxu2 %vm618_vm0, %v1354_v18  ;;  %vm1834_vm4 = vweird.f32 %v2593_v21 }
 0x3b1   : > { %v1826_v27 = vsel %vm1823_vm3, %v1825_v23, %v1821_v60  ;;  %2596 = vrcp.f32 %v1685_v24  ;;  %vm1835_vm6 = vmor %vm1833_vm5, %vm1834_vm4  ;;  %v1852_v46 = vand.u32 2147483647, %v1685_v24  ;;  %v1854_v48 = vand.u32 2147483648, %v1685_v24 }
 0x3b2   : > { %2195 = vst [vmem:[%s3431_s25 + $0x38] sm:$0xff] %v1826_v27  ;;  %v1830_v28 = vsub.f32 1.0, %v1829_v25  ;;  %vm1848_vm9 = vweird.f32 %v1685_v24 }
 0x3b3   : > { %v1315_v31 = vpop.f32.mrf.mxu3  ;;  %v1517_v32 = vpop.f32.mrf.mxu2  ;;  %v1855_v59 = vor.u32 1.1754944e-38, %v1854_v48  ;;  %vm1853_vm11 = vcmp.eq.f32.partialorder %v1852_v46, 8.507059e+37 }
 0x3b4   : > { %v1831_v2 = vmul.f32 %v2593_v21, %v1830_v28  ;;  %v1316_v34 = vadd.f32 %v3337_v15, %v1315_v31  ;;  %v1518_v51 = vadd.f32 %v3415_v5, %v1517_v32 }
 0x3b6   : > { %v2595_v35 = vpop.eup %2594  ;;  %v1832_v36 = vadd.f32 %v2593_v21, %v1831_v2  ;;  %v1355_v38 = vmax.f32 %v1316_v34, 0.0  ;;  %v2457_v37 = vmul.f32 -1.442695, %v1518_v51 }
 0x3b7   : > { %v2597_v7 = vpop.eup %2596  ;;  %v1686_v43 = vadd.f32 1.0, %v2595_v35 }
 0x3b8   : > { %v1836_v6 = vsel %vm1835_vm6, %v2593_v21, %v1832_v36  ;;  %v1844_v44 = vmul.f32 %v2597_v7, %v1685_v24  ;;  %2598 = vpow2.f32 %v2457_v37  ;;  %2442 = vmatmul.msk.f32.gmra.mxu2 %vm618_vm0, %v1355_v38  ;;  %vm1849_vm8 = vweird.f32 %v2597_v7 }
 0x3b9   : > { %v1841_v10 = vsel %vm1838_vm7, %v1840_v39, %v1836_v6  ;;  %2600 = vrcp.f32 %v1686_v43  ;;  %vm1850_vm10 = vmor %vm1848_vm9, %vm1849_vm8  ;;  %v1867_v49 = vand.u32 2147483647, %v1686_v43  ;;  %v1869_v26 = vand.u32 2147483648, %v1686_v43 }
 0x3ba   : > { %2196 = vst [vmem:[%s3431_s25 + $0x40] sm:$0xff] %v1841_v10  ;;  %v1845_v12 = vsub.f32 1.0, %v1844_v44  ;;  %vm1863_vm13 = vweird.f32 %v1686_v43 }
 0x3bb   : > { %v1318_v50 = vpop.f32.mrf.mxu3  ;;  %v1520_v40 = vpop.f32.mrf.mxu2  ;;  %v1870_v52 = vor.u32 1.1754944e-38, %v1869_v26  ;;  %vm1868_vm15 = vcmp.eq.f32.partialorder %v1867_v49, 8.507059e+37 }
 0x3bc   : > { %v1846_v54 = vmul.f32 %v2597_v7, %v1845_v12  ;;  %v1319_v55 = vadd.f32 %v3337_v15, %v1318_v50  ;;  %v1521_v14 = vadd.f32 %v3415_v5, %v1520_v40 }
 0x3be   : > { %v2599_v53 = vpop.eup %2598  ;;  %v1847_v56 = vadd.f32 %v2597_v7, %v1846_v54  ;;  %v1356_v42 = vmax.f32 %v1319_v55, 0.0  ;;  %v2458_v57 = vmul.f32 -1.442695, %v1521_v14 }
 0x3bf   : > { %v2601_v58 = vpop.eup %2600  ;;  %v1687_v47 = vadd.f32 1.0, %v2599_v53 }
 0x3c0   : > { %v1851_v61 = vsel %vm1850_vm10, %v2597_v7, %v1847_v56  ;;  %v1859_v22 = vmul.f32 %v2601_v58, %v1686_v43  ;;  %2602 = vpow2.f32 %v2458_v57  ;;  %2443 = vmatmul.msk.f32.gmra.mxu2 %vm618_vm0, %v1356_v42  ;;  %vm1864_vm12 = vweird.f32 %v2601_v58 }
 0x3c1   : > { %v1856_v62 = vsel %vm1853_vm11, %v1855_v59, %v1851_v61  ;;  %2604 = vrcp.f32 %v1687_v47  ;;  %vm1865_vm14 = vmor %vm1863_vm13, %vm1864_vm12  ;;  %v1882_v20 = vand.u32 2147483647, %v1687_v47  ;;  %v1884_v21 = vand.u32 2147483648, %v1687_v47 }
 0x3c2   : > { %2197 = vst [vmem:[%s3431_s25 + $0x48] sm:$0xff] %v1856_v62  ;;  %v1860_v63 = vsub.f32 1.0, %v1859_v22  ;;  %vm1878_vm2 = vweird.f32 %v1687_v47 }
 0x3c3   : > { %v1321_v41 = vpop.f32.mrf.mxu3  ;;  %v1523_v1 = vpop.f32.mrf.mxu2  ;;  %v1885_v2 = vor.u32 1.1754944e-38, %v1884_v21  ;;  %vm1883_vm4 = vcmp.eq.f32.partialorder %v1882_v20, 8.507059e+37 }
 0x3c4   : > { %v1861_v3 = vmul.f32 %v2601_v58, %v1860_v63  ;;  %v1322_v30 = vadd.f32 %v3337_v15, %v1321_v41  ;;  %v1524_v4 = vadd.f32 %v3415_v5, %v1523_v1 }
 0x3c6   : > { %v2603_v45 = vpop.eup %2602  ;;  %v1862_v8 = vadd.f32 %v2601_v58, %v1861_v3  ;;  %v1357_v9 = vmax.f32 %v1322_v30, 0.0  ;;  %v2459_v11 = vmul.f32 -1.442695, %v1524_v4 }
 0x3c7   : > { %v2605_v13 = vpop.eup %2604  ;;  %v1688_v33 = vadd.f32 1.0, %v2603_v45 }
 0x3c8   : > { %v1866_v16 = vsel %vm1865_vm14, %v2601_v58, %v1862_v8  ;;  %v1874_v17 = vmul.f32 %v2605_v13, %v1687_v47  ;;  %2606 = vpow2.f32 %v2459_v11  ;;  %2444 = vmatmul.msk.f32.gmra.mxu2 %vm618_vm0, %v1357_v9  ;;  %vm1879_vm1 = vweird.f32 %v2605_v13 }
 0x3c9   : > { %v1871_v19 = vsel %vm1868_vm15, %v1870_v52, %v1866_v16  ;;  %2608 = vrcp.f32 %v1688_v33  ;;  %vm1880_vm3 = vmor %vm1878_vm2, %vm1879_vm1  ;;  %v1899_v38 = vand.u32 2147483648, %v1688_v33  ;;  %v1897_v39 = vand.u32 2147483647, %v1688_v33 }
 0x3ca   : > { %2198 = vst [vmem:[%s3431_s25 + $0x50] sm:$0xff] %v1871_v19  ;;  %v1875_v18 = vsub.f32 1.0, %v1874_v17  ;;  %vm1893_vm6 = vweird.f32 %v1688_v33 }
 0x3cb   : > { %v1324_v23 = vpop.f32.mrf.mxu3  ;;  %v1526_v24 = vpop.f32.mrf.mxu2  ;;  %v1900_v46 = vor.u32 1.1754944e-38, %v1899_v38 }
 0x3cc   : > { %v1876_v60 = vmul.f32 %v2605_v13, %v1875_v18  ;;  %v1325_v25 = vadd.f32 %v3337_v15, %v1324_v23  ;;  %v1527_v27 = vadd.f32 %v3415_v5, %v1526_v24 }
 0x3ce   : > { %v2607_v28 = vpop.eup %2606  ;;  %v1877_v29 = vadd.f32 %v2605_v13, %v1876_v60  ;;  %v1358_v0 = vmax.f32 %v1325_v25, 0.0  ;;  %v2460_v31 = vmul.f32 -1.442695, %v1527_v27 }
 0x3cf   : > { %v2609_v32 = vpop.eup %2608  ;;  %v1689_v34 = vadd.f32 1.0, %v2607_v28 }
 0x3d0   : > { %v1881_v51 = vsel %vm1880_vm3, %v2605_v13, %v1877_v29  ;;  %v1889_v35 = vmul.f32 %v2609_v32, %v1688_v33  ;;  %2610 = vpow2.f32 %v2460_v31  ;;  %2445 = vmatmul.msk.f32.gmra.mxu2 %vm618_vm0, %v1358_v0  ;;  %vm1894_vm5 = vweird.f32 %v2609_v32 }
 0x3d1   : > { %v1886_v36 = vsel %vm1883_vm4, %v1885_v2, %v1881_v51  ;;  %2612 = vrcp.f32 %v1689_v34  ;;  %vm1895_vm7 = vmor %vm1893_vm6, %vm1894_vm5  ;;  %vm1898_vm0 = vcmp.eq.f32.partialorder %v1897_v39, 8.507059e+37  ;;  %v1914_v14 = vand.u32 2147483648, %v1689_v34 }
 0x3d2   : > { %2199 = vst [vmem:[%s3431_s25 + $0x58] sm:$0xff] %v1886_v36  ;;  %v1890_v15 = vsub.f32 1.0, %v1889_v35  ;;  %v1912_v42 = vand.u32 2147483647, %v1689_v34  ;;  %vm1908_vm9 = vweird.f32 %v1689_v34 }
 0x3d3   : > { %v1529_v37 = vpop.f32.mrf.mxu2  ;;  %v1915_v22 = vor.u32 1.1754944e-38, %v1914_v14 }
 0x3d4   : > { %v1891_v7 = vmul.f32 %v2609_v32, %v1890_v15  ;;  %v1530_v43 = vadd.f32 %v3415_v5, %v1529_v37  ;;  %vm1913_vm11 = vcmp.eq.f32.partialorder %v1912_v42, 8.507059e+37 }
 0x3d6   : > { %v2611_v6 = vpop.eup %2610  ;;  %v1892_v44 = vadd.f32 %v2609_v32, %v1891_v7  ;;  %v2461_v10 = vmul.f32 -1.442695, %v1530_v43 }
 0x3d7   : > { %v2613_v12 = vpop.eup %2612  ;;  %v1690_v48 = vadd.f32 1.0, %v2611_v6 }
 0x3d8   : > { %v1896_v50 = vsel %vm1895_vm7, %v2609_v32, %v1892_v44  ;;  %v1904_v40 = vmul.f32 %v2613_v12, %v1689_v34  ;;  %2614 = vpow2.f32 %v2461_v10  ;;  %vm1909_vm8 = vweird.f32 %v2613_v12 }
 0x3d9   : > { %v1901_v54 = vsel %vm1898_vm0, %v1900_v46, %v1896_v50  ;;  %2616 = vrcp.f32 %v1690_v48  ;;  %vm1910_vm10 = vmor %vm1908_vm9, %vm1909_vm8  ;;  %v1929_v1 = vand.u32 2147483648, %v1690_v48  ;;  %v1927_v4 = vand.u32 2147483647, %v1690_v48 }
 0x3da   : > { %2200 = vst [vmem:[%s3431_s25 + $0x60] sm:$0xff] %v1901_v54  ;;  %v1905_v55 = vsub.f32 1.0, %v1904_v40  ;;  %vm1923_vm13 = vweird.f32 %v1690_v48 }
 0x3db   : > { %v1532_v53 = vpop.f32.mrf.mxu2  ;;  %v1930_v52 = vor.u32 1.1754944e-38, %v1929_v1  ;;  %vm1928_vm15 = vcmp.eq.f32.partialorder %v1927_v4, 8.507059e+37 }
 0x3dc   : > { %v1906_v56 = vmul.f32 %v2613_v12, %v1905_v55  ;;  %v1533_v57 = vadd.f32 %v3415_v5, %v1532_v53 }
 0x3de   : > { %v2615_v58 = vpop.eup %2614  ;;  %v1907_v59 = vadd.f32 %v2613_v12, %v1906_v56  ;;  %v2462_v47 = vmul.f32 -1.442695, %v1533_v57 }
 0x3df   : > { %v2617_v61 = vpop.eup %2616  ;;  %v1691_v62 = vadd.f32 1.0, %v2615_v58 }
 0x3e0   : > { %v1911_v63 = vsel %vm1910_vm10, %v2613_v12, %v1907_v59  ;;  %v1919_v49 = vmul.f32 %v2617_v61, %v1690_v48  ;;  %2618 = vpow2.f32 %v2462_v47  ;;  %vm1924_vm12 = vweird.f32 %v2617_v61 }
 0x3e1   : > { %v1916_v26 = vsel %vm1913_vm11, %v1915_v22, %v1911_v63  ;;  %2620 = vrcp.f32 %v1691_v62  ;;  %vm1925_vm14 = vmor %vm1923_vm13, %vm1924_vm12  ;;  %v1944_v20 = vand.u32 2147483648, %v1691_v62  ;;  %v1942_v24 = vand.u32 2147483647, %v1691_v62 }
 0x3e2   : > { %2201 = vst [vmem:[%s3431_s25 + $0x68] sm:$0xff] %v1916_v26  ;;  %v1920_v41 = vsub.f32 1.0, %v1919_v49  ;;  %vm1938_vm2 = vweird.f32 %v1691_v62 }
 0x3e3   : > { %v1535_v3 = vpop.f32.mrf.mxu2  ;;  %v1945_v0 = vor.u32 1.1754944e-38, %v1944_v20  ;;  %vm1943_vm4 = vcmp.eq.f32.partialorder %v1942_v24, 8.507059e+37 }
 0x3e4   : > { %v1921_v30 = vmul.f32 %v2617_v61, %v1920_v41  ;;  %v1536_v45 = vadd.f32 %v3415_v5, %v1535_v3 }
 0x3e6   : > { %v2619_v8 = vpop.eup %2618  ;;  %v1922_v9 = vadd.f32 %v2617_v61, %v1921_v30  ;;  %v2463_v11 = vmul.f32 -1.442695, %v1536_v45 }
 0x3e7   : > { %v2621_v13 = vpop.eup %2620  ;;  %v1692_v33 = vadd.f32 1.0, %v2619_v8 }
 0x3e8   : > { %v1926_v16 = vsel %vm1925_vm14, %v2617_v61, %v1922_v9  ;;  %v1934_v17 = vmul.f32 %v2621_v13, %v1691_v62  ;;  %2622 = vpow2.f32 %v2463_v11  ;;  %vm1939_vm1 = vweird.f32 %v2621_v13 }
 0x3e9   : > { %v1931_v19 = vsel %vm1928_vm15, %v1930_v52, %v1926_v16  ;;  %2624 = vrcp.f32 %v1692_v33  ;;  %vm1940_vm3 = vmor %vm1938_vm2, %vm1939_vm1  ;;  %v1959_v35 = vand.u32 2147483648, %v1692_v33  ;;  %v1957_v38 = vand.u32 2147483647, %v1692_v33 }
 0x3ea   : > { %2202 = vst [vmem:[%s3431_s25 + $0x70] sm:$0xff] %v1931_v19  ;;  %v1935_v18 = vsub.f32 1.0, %v1934_v17  ;;  %vm1953_vm6 = vweird.f32 %v1692_v33 }
 0x3eb   : > { %v1538_v21 = vpop.f32.mrf.mxu2  ;;  %v1960_v44 = vor.u32 1.1754944e-38, %v1959_v35  ;;  %vm1958_vm0 = vcmp.eq.f32.partialorder %v1957_v38, 8.507059e+37  ;;  %v3497_v35 = vld [vmem:[%s3564_s10] ss:$0 sm:$0xff] }
 0x3ec   : > { %v1936_v23 = vmul.f32 %v2621_v13, %v1935_v18  ;;  %v1539_v60 = vadd.f32 %v3415_v5, %v1538_v21 }
 0x3ee   : > { %v2623_v25 = vpop.eup %2622  ;;  %v1937_v27 = vadd.f32 %v2621_v13, %v1936_v23  ;;  %v2464_v28 = vmul.f32 -1.442695, %v1539_v60 }
 0x3ef   : > { %v2625_v29 = vpop.eup %2624  ;;  %v1693_v31 = vadd.f32 1.0, %v2623_v25 }
 0x3f0   : > { %v1941_v32 = vsel %vm1940_vm3, %v2621_v13, %v1937_v27  ;;  %v1949_v2 = vmul.f32 %v2625_v29, %v1692_v33  ;;  %2626 = vpow2.f32 %v2464_v28  ;;  %vm1954_vm5 = vweird.f32 %v2625_v29 }
 0x3f1   : > { %v1946_v34 = vsel %vm1943_vm4, %v1945_v0, %v1941_v32  ;;  %2628 = vrcp.f32 %v1693_v31  ;;  %vm1955_vm7 = vmor %vm1953_vm6, %vm1954_vm5  ;;  %v1974_v40 = vand.u32 2147483648, %v1693_v31  ;;  %v1972_v14 = vand.u32 2147483647, %v1693_v31 }
 0x3f2   : > { %2203 = vst [vmem:[%s3431_s25 + $0x78] sm:$0xff] %v1946_v34  ;;  %v1950_v51 = vsub.f32 1.0, %v1949_v2  ;;  %vm1968_vm9 = vweird.f32 %v1693_v31 }
 0x3f3   : > { %v1541_v36 = vpop.f32.mrf.mxu2  ;;  %v1975_v59 = vor.u32 1.1754944e-38, %v1974_v40  ;;  %vm1973_vm11 = vcmp.eq.f32.partialorder %v1972_v14, 8.507059e+37 }
 0x3f4   : > { %v1951_v15 = vmul.f32 %v2625_v29, %v1950_v51  ;;  %v1542_v37 = vadd.f32 %v3415_v5, %v1541_v36 }
 0x3f6   : > { %v2627_v7 = vpop.eup %2626  ;;  %v1952_v39 = vadd.f32 %v2625_v29, %v1951_v15  ;;  %v2465_v43 = vmul.f32 -1.442695, %v1542_v37 }
 0x3f7   : > { %v2629_v6 = vpop.eup %2628  ;;  %v1694_v10 = vadd.f32 1.0, %v2627_v7 }
 0x3f8   : > { %v1956_v12 = vsel %vm1955_vm7, %v2625_v29, %v1952_v39  ;;  %v1964_v46 = vmul.f32 %v2629_v6, %v1693_v31  ;;  %2630 = vpow2.f32 %v2465_v43  ;;  %vm1969_vm8 = vweird.f32 %v2629_v6 }
 0x3f9   : > { %v1961_v48 = vsel %vm1958_vm0, %v1960_v44, %v1956_v12  ;;  %2632 = vrcp.f32 %v1694_v10  ;;  %vm1970_vm10 = vmor %vm1968_vm9, %vm1969_vm8  ;;  %v1989_v49 = vand.u32 2147483648, %v1694_v10  ;;  %v1987_v1 = vand.u32 2147483647, %v1694_v10 }
 0x3fa   : > { %2204 = vst [vmem:[%s3431_s25 + $0x80] sm:$0xff] %v1961_v48  ;;  %v1965_v50 = vsub.f32 1.0, %v1964_v46  ;;  %vm1983_vm13 = vweird.f32 %v1694_v10 }
 0x3fb   : > { %v1544_v54 = vpop.f32.mrf.mxu2  ;;  %v1990_v9 = vor.u32 1.1754944e-38, %v1989_v49  ;;  %vm1988_vm15 = vcmp.eq.f32.partialorder %v1987_v1, 8.507059e+37 }
 0x3fc   : > { %v1966_v55 = vmul.f32 %v2629_v6, %v1965_v50  ;;  %v1545_v53 = vadd.f32 %v3415_v5, %v1544_v54 }
 0x3fe   : > { %v2631_v56 = vpop.eup %2630  ;;  %v1967_v42 = vadd.f32 %v2629_v6, %v1966_v55  ;;  %v2466_v57 = vmul.f32 -1.442695, %v1545_v53 }
 0x3ff   : > { %v2633_v58 = vpop.eup %2632  ;;  %v1695_v47 = vadd.f32 1.0, %v2631_v56 }
 0x400   : > { %v1971_v61 = vsel %vm1970_vm10, %v2629_v6, %v1967_v42  ;;  %v1979_v22 = vmul.f32 %v2633_v58, %v1694_v10  ;;  %2634 = vpow2.f32 %v2466_v57  ;;  %vm1984_vm12 = vweird.f32 %v2633_v58 }
 0x401   : > { %v1976_v62 = vsel %vm1973_vm11, %v1975_v59, %v1971_v61  ;;  %2636 = vrcp.f32 %v1695_v47  ;;  %vm1985_vm14 = vmor %vm1983_vm13, %vm1984_vm12  ;;  %v2004_v17 = vand.u32 2147483648, %v1695_v47  ;;  %v2002_v20 = vand.u32 2147483647, %v1695_v47 }
 0x402   : > { %2205 = vst [vmem:[%s3431_s25 + $0x88] sm:$0xff] %v1976_v62  ;;  %v1980_v63 = vsub.f32 1.0, %v1979_v22  ;;  %vm1998_vm2 = vweird.f32 %v1695_v47 }
 0x403   : > { %v1547_v26 = vpop.f32.mrf.mxu2  ;;  %v2005_v27 = vor.u32 1.1754944e-38, %v2004_v17  ;;  %vm2003_vm4 = vcmp.eq.f32.partialorder %v2002_v20, 8.507059e+37 }
 0x404   : > { %v1981_v41 = vmul.f32 %v2633_v58, %v1980_v63  ;;  %v1548_v3 = vadd.f32 %v3415_v5, %v1547_v26 }
 0x406   : > { %v2635_v30 = vpop.eup %2634  ;;  %v1982_v4 = vadd.f32 %v2633_v58, %v1981_v41  ;;  %v2467_v45 = vmul.f32 -1.442695, %v1548_v3 }
 0x407   : > { %v2637_v8 = vpop.eup %2636  ;;  %v1696_v11 = vadd.f32 1.0, %v2635_v30 }
 0x408   : > { %v1986_v13 = vsel %vm1985_vm14, %v2633_v58, %v1982_v4  ;;  %v1994_v52 = vmul.f32 %v2637_v8, %v1695_v47  ;;  %2638 = vpow2.f32 %v2467_v45  ;;  %vm1999_vm1 = vweird.f32 %v2637_v8 }
 0x409   : > { %v1991_v33 = vsel %vm1988_vm15, %v1990_v9, %v1986_v13  ;;  %2640 = vrcp.f32 %v1696_v11  ;;  %vm2000_vm3 = vmor %vm1998_vm2, %vm1999_vm1  ;;  %v2019_v2 = vand.u32 2147483648, %v1696_v11  ;;  %vm2013_vm6 = vweird.f32 %v1696_v11 }
 0x40a   : > { %2206 = vst [vmem:[%s3431_s25 + $0x90] sm:$0xff] %v1991_v33  ;;  %v1995_v16 = vsub.f32 1.0, %v1994_v52 }
 0x40b   : > { %v1550_v19 = vpop.f32.mrf.mxu2  ;;  %v2020_v39 = vor.u32 1.1754944e-38, %v2019_v2 }
 0x40c   : > { %v1996_v18 = vmul.f32 %v2637_v8, %v1995_v16  ;;  %v1551_v21 = vadd.f32 %v3415_v5, %v1550_v19  ;;  %v2017_v5 = vand.u32 2147483647, %v1696_v11 }
 0x40e   : > { %v2639_v23 = vpop.eup %2638  ;;  %v1997_v24 = vadd.f32 %v2637_v8, %v1996_v18  ;;  %v2468_v60 = vmul.f32 -1.442695, %v1551_v21  ;;  %vm2018_vm0 = vcmp.eq.f32.partialorder %v2017_v5, 8.507059e+37 }
 0x40f   : > { %v2641_v25 = vpop.eup %2640  ;;  %v1697_v28 = vadd.f32 1.0, %v2639_v23 }
 0x410   : > { %v2001_v29 = vsel %vm2000_vm3, %v2637_v8, %v1997_v24  ;;  %v2009_v0 = vmul.f32 %v2641_v25, %v1696_v11  ;;  %2642 = vpow2.f32 %v2468_v60  ;;  %vm2014_vm5 = vweird.f32 %v2641_v25 }
 0x411   : > { %v2006_v31 = vsel %vm2003_vm4, %v2005_v27, %v2001_v29  ;;  %2644 = vrcp.f32 %v1697_v28  ;;  %vm2015_vm7 = vmor %vm2013_vm6, %vm2014_vm5  ;;  %v2034_v46 = vand.u32 2147483648, %v1697_v28  ;;  %v2032_v40 = vand.u32 2147483647, %v1697_v28 }
 0x412   : > { %2207 = vst [vmem:[%s3431_s25 + $0x98] sm:$0xff] %v2006_v31  ;;  %v2010_v32 = vsub.f32 1.0, %v2009_v0  ;;  %vm2028_vm9 = vweird.f32 %v1697_v28 }
 0x413   : > { %v1553_v34 = vpop.f32.mrf.mxu2  ;;  %v2035_v42 = vor.u32 1.1754944e-38, %v2034_v46  ;;  %vm2033_vm11 = vcmp.eq.f32.partialorder %v2032_v40, 8.507059e+37 }
 0x414   : > { %v2011_v51 = vmul.f32 %v2641_v25, %v2010_v32  ;;  %v1554_v36 = vadd.f32 %v3497_v35, %v1553_v34 }
 0x416   : > { %v2643_v15 = vpop.eup %2642  ;;  %v2012_v38 = vadd.f32 %v2641_v25, %v2011_v51  ;;  %v2469_v37 = vmul.f32 -1.442695, %v1554_v36 }
 0x417   : > { %v2645_v7 = vpop.eup %2644  ;;  %v1698_v43 = vadd.f32 1.0, %v2643_v15 }
 0x418   : > { %v2016_v6 = vsel %vm2015_vm7, %v2641_v25, %v2012_v38  ;;  %v2024_v44 = vmul.f32 %v2645_v7, %v1697_v28  ;;  %2646 = vpow2.f32 %v2469_v37  ;;  %vm2029_vm8 = vweird.f32 %v2645_v7 }
 0x419   : > { %v2021_v10 = vsel %vm2018_vm0, %v2020_v39, %v2016_v6  ;;  %2648 = vrcp.f32 %v1698_v43  ;;  %vm2030_vm10 = vmor %vm2028_vm9, %vm2029_vm8  ;;  %v2049_v22 = vand.u32 2147483648, %v1698_v43  ;;  %v2047_v49 = vand.u32 2147483647, %v1698_v43 }
 0x41a   : > { %2208 = vst [vmem:[%s3431_s25 + $0xa0] sm:$0xff] %v2021_v10  ;;  %v2025_v12 = vsub.f32 1.0, %v2024_v44  ;;  %vm2043_vm13 = vweird.f32 %v1698_v43 }
 0x41b   : > { %v1556_v48 = vpop.f32.mrf.mxu2  ;;  %v2050_v4 = vor.u32 1.1754944e-38, %v2049_v22  ;;  %vm2048_vm15 = vcmp.eq.f32.partialorder %v2047_v49, 8.507059e+37 }
 0x41c   : > { %v2026_v50 = vmul.f32 %v2645_v7, %v2025_v12  ;;  %v1557_v54 = vadd.f32 %v3497_v35, %v1556_v48 }
 0x41e   : > { %v2647_v55 = vpop.eup %2646  ;;  %v2027_v14 = vadd.f32 %v2645_v7, %v2026_v50  ;;  %v2470_v53 = vmul.f32 -1.442695, %v1557_v54 }
 0x41f   : > { %v2649_v56 = vpop.eup %2648  ;;  %v1699_v57 = vadd.f32 1.0, %v2647_v55 }
 0x420   : > { %v2031_v58 = vsel %vm2030_vm10, %v2645_v7, %v2027_v14  ;;  %v2039_v59 = vmul.f32 %v2649_v56, %v1698_v43  ;;  %2650 = vpow2.f32 %v2470_v53  ;;  %vm2044_vm12 = vweird.f32 %v2649_v56 }
 0x421   : > { %v2036_v47 = vsel %vm2033_vm11, %v2035_v42, %v2031_v58  ;;  %2652 = vrcp.f32 %v1699_v57  ;;  %vm2045_vm14 = vmor %vm2043_vm13, %vm2044_vm12  ;;  %v2064_v52 = vand.u32 2147483648, %v1699_v57  ;;  %v2062_v17 = vand.u32 2147483647, %v1699_v57 }
 0x422   : > { %2209 = vst [vmem:[%s3431_s25 + $0xa8] sm:$0xff] %v2036_v47  ;;  %v2040_v61 = vsub.f32 1.0, %v2039_v59  ;;  %vm2058_vm2 = vweird.f32 %v1699_v57 }
 0x423   : > { %v1559_v62 = vpop.f32.mrf.mxu2  ;;  %v2065_v24 = vor.u32 1.1754944e-38, %v2064_v52  ;;  %vm2063_vm4 = vcmp.eq.f32.partialorder %v2062_v17, 8.507059e+37 }
 0x424   : > { %v2041_v63 = vmul.f32 %v2649_v56, %v2040_v61  ;;  %v1560_v26 = vadd.f32 %v3497_v35, %v1559_v62 }
 0x426   : > { %v2651_v41 = vpop.eup %2650  ;;  %v2042_v1 = vadd.f32 %v2649_v56, %v2041_v63  ;;  %v2471_v3 = vmul.f32 -1.442695, %v1560_v26 }
 0x427   : > { %v2653_v30 = vpop.eup %2652  ;;  %v1700_v45 = vadd.f32 1.0, %v2651_v41 }
 0x428   : > { %v2046_v8 = vsel %vm2045_vm14, %v2649_v56, %v2042_v1  ;;  %v2054_v9 = vmul.f32 %v2653_v30, %v1699_v57  ;;  %2654 = vpow2.f32 %v2471_v3  ;;  %vm2059_vm1 = vweird.f32 %v2653_v30 }
 0x429   : > { %v2051_v11 = vsel %vm2048_vm15, %v2050_v4, %v2046_v8  ;;  %2656 = vrcp.f32 %v1700_v45  ;;  %vm2060_vm3 = vmor %vm2058_vm2, %vm2059_vm1  ;;  %v2079_v0 = vand.u32 2147483648, %v1700_v45  ;;  %v2077_v2 = vand.u32 2147483647, %v1700_v45 }
 0x42a   : > { %2210 = vst [vmem:[%s3431_s25 + $0xb0] sm:$0xff] %v2051_v11  ;;  %v2055_v13 = vsub.f32 1.0, %v2054_v9  ;;  %vm2073_vm6 = vweird.f32 %v1700_v45 }
 0x42b   : > { %v1562_v33 = vpop.f32.mrf.mxu2  ;;  %v2080_v38 = vor.u32 1.1754944e-38, %v2079_v0  ;;  %vm2078_vm0 = vcmp.eq.f32.partialorder %v2077_v2, 8.507059e+37 }
 0x42c   : > { %v2056_v16 = vmul.f32 %v2653_v30, %v2055_v13  ;;  %v1563_v19 = vadd.f32 %v3497_v35, %v1562_v33 }
 0x42e   : > { %v2655_v18 = vpop.eup %2654  ;;  %v2057_v20 = vadd.f32 %v2653_v30, %v2056_v16  ;;  %v2472_v21 = vmul.f32 -1.442695, %v1563_v19 }
 0x42f   : > { %v2657_v23 = vpop.eup %2656  ;;  %v1701_v60 = vadd.f32 1.0, %v2655_v18 }
 0x430   : > { %v2061_v25 = vsel %vm2060_vm3, %v2653_v30, %v2057_v20  ;;  %v2069_v27 = vmul.f32 %v2657_v23, %v1700_v45  ;;  %2658 = vpow2.f32 %v2472_v21  ;;  %vm2074_vm5 = vweird.f32 %v2657_v23 }
 0x431   : > { %v2066_v28 = vsel %vm2063_vm4, %v2065_v24, %v2061_v25  ;;  %2660 = vrcp.f32 %v1701_v60  ;;  %vm2075_vm7 = vmor %vm2073_vm6, %vm2074_vm5  ;;  %v2094_v44 = vand.u32 2147483648, %v1701_v60  ;;  %v2092_v46 = vand.u32 2147483647, %v1701_v60 }
 0x432   : > { %2211 = vst [vmem:[%s3431_s25 + $0xb8] sm:$0xff] %v2066_v28  ;;  %v2070_v29 = vsub.f32 1.0, %v2069_v27  ;;  %vm2088_vm9 = vweird.f32 %v1701_v60 }
 0x433   : > { %v1565_v31 = vpop.f32.mrf.mxu2  ;;  %v2095_v14 = vor.u32 1.1754944e-38, %v2094_v44  ;;  %vm2093_vm11 = vcmp.eq.f32.partialorder %v2092_v46, 8.507059e+37 }
 0x434   : > { %v2071_v32 = vmul.f32 %v2657_v23, %v2070_v29  ;;  %v1566_v34 = vadd.f32 %v3497_v35, %v1565_v31 }
 0x436   : > { %v2659_v51 = vpop.eup %2658  ;;  %v2072_v5 = vadd.f32 %v2657_v23, %v2071_v32  ;;  %v2473_v36 = vmul.f32 -1.442695, %v1566_v34 }
 0x437   : > { %v2661_v15 = vpop.eup %2660  ;;  %v1702_v37 = vadd.f32 1.0, %v2659_v51 }
 0x438   : > { %v2076_v7 = vsel %vm2075_vm7, %v2657_v23, %v2072_v5  ;;  %v2084_v39 = vmul.f32 %v2661_v15, %v1701_v60  ;;  %2662 = vpow2.f32 %v2473_v36  ;;  %vm2089_vm8 = vweird.f32 %v2661_v15 }
 0x439   : > { %v2081_v43 = vsel %vm2078_vm0, %v2080_v38, %v2076_v7  ;;  %2664 = vrcp.f32 %v1702_v37  ;;  %vm2090_vm10 = vmor %vm2088_vm9, %vm2089_vm8  ;;  %v2109_v59 = vand.u32 2147483648, %v1702_v37  ;;  %v2107_v22 = vand.u32 2147483647, %v1702_v37 }
 0x43a   : > { %2212 = vst [vmem:[%s3431_s25 + $0xc0] sm:$0xff] %v2081_v43  ;;  %v2085_v6 = vsub.f32 1.0, %v2084_v39  ;;  %vm2103_vm13 = vweird.f32 %v1702_v37 }
 0x43b   : > { %v1568_v10 = vpop.f32.mrf.mxu2  ;;  %v2110_v1 = vor.u32 1.1754944e-38, %v2109_v59  ;;  %vm2108_vm15 = vcmp.eq.f32.partialorder %v2107_v22, 8.507059e+37 }
 0x43c   : > { %v2086_v12 = vmul.f32 %v2661_v15, %v2085_v6  ;;  %v1569_v48 = vadd.f32 %v3497_v35, %v1568_v10 }
 0x43e   : > { %v2663_v50 = vpop.eup %2662  ;;  %v2087_v40 = vadd.f32 %v2661_v15, %v2086_v12  ;;  %v2474_v54 = vmul.f32 -1.442695, %v1569_v48 }
 0x43f   : > { %v2665_v55 = vpop.eup %2664  ;;  %v1703_v53 = vadd.f32 1.0, %v2663_v50 }
 0x440   : > { %v2091_v56 = vsel %vm2090_vm10, %v2661_v15, %v2087_v40  ;;  %v2099_v42 = vmul.f32 %v2665_v55, %v1702_v37  ;;  %2666 = vpow2.f32 %v2474_v54  ;;  %vm2104_vm12 = vweird.f32 %v2665_v55 }
 0x441   : > { %v2096_v57 = vsel %vm2093_vm11, %v2095_v14, %v2091_v56  ;;  %2668 = vrcp.f32 %v1703_v53  ;;  %vm2105_vm14 = vmor %vm2103_vm13, %vm2104_vm12  ;;  %v2124_v9 = vand.u32 2147483648, %v1703_v53  ;;  %v2122_v52 = vand.u32 2147483647, %v1703_v53 }
 0x442   : > { %2213 = vst [vmem:[%s3431_s25 + $0xc8] sm:$0xff] %v2096_v57  ;;  %v2100_v58 = vsub.f32 1.0, %v2099_v42  ;;  %vm2118_vm2 = vweird.f32 %v1703_v53 }
 0x443   : > { %v1571_v47 = vpop.f32.mrf.mxu2  ;;  %v2125_v20 = vor.u32 1.1754944e-38, %v2124_v9  ;;  %vm2123_vm4 = vcmp.eq.f32.partialorder %v2122_v52, 8.507059e+37 }
 0x444   : > { %v2101_v61 = vmul.f32 %v2665_v55, %v2100_v58  ;;  %v1572_v62 = vadd.f32 %v3497_v35, %v1571_v47 }
 0x446   : > { %v2667_v63 = vpop.eup %2666  ;;  %v2102_v49 = vadd.f32 %v2665_v55, %v2101_v61  ;;  %v2475_v26 = vmul.f32 -1.442695, %v1572_v62 }
 0x447   : > { %v2669_v41 = vpop.eup %2668  ;;  %v1704_v3 = vadd.f32 1.0, %v2667_v63 }
 0x448   : > { %v2106_v30 = vsel %vm2105_vm14, %v2665_v55, %v2102_v49  ;;  %v2114_v4 = vmul.f32 %v2669_v41, %v1703_v53  ;;  %2670 = vpow2.f32 %v2475_v26  ;;  %vm2119_vm1 = vweird.f32 %v2669_v41 }
 0x449   : > { %v2111_v45 = vsel %vm2108_vm15, %v2110_v1, %v2106_v30  ;;  %2672 = vrcp.f32 %v1704_v3  ;;  %vm2120_vm3 = vmor %vm2118_vm2, %vm2119_vm1  ;;  %v2139_v27 = vand.u32 2147483648, %v1704_v3  ;;  %v2137_v0 = vand.u32 2147483647, %v1704_v3 }
 0x44a   : > { %2214 = vst [vmem:[%s3431_s25 + $0xd0] sm:$0xff] %v2111_v45  ;;  %v2115_v8 = vsub.f32 1.0, %v2114_v4  ;;  %vm2133_vm6 = vweird.f32 %v1704_v3 }
 0x44b   : > { %v1574_v11 = vpop.f32.mrf.mxu2  ;;  %v2140_v5 = vor.u32 1.1754944e-38, %v2139_v27  ;;  %vm2138_vm0 = vcmp.eq.f32.partialorder %v2137_v0, 8.507059e+37 }
 0x44c   : > { %v2116_v13 = vmul.f32 %v2669_v41, %v2115_v8  ;;  %v1575_v33 = vadd.f32 %v3497_v35, %v1574_v11 }
 0x44e   : > { %v2671_v16 = vpop.eup %2670  ;;  %v2117_v17 = vadd.f32 %v2669_v41, %v2116_v13  ;;  %v2476_v19 = vmul.f32 -1.442695, %v1575_v33 }
 0x44f   : > { %v2673_v18 = vpop.eup %2672  ;;  %v1705_v21 = vadd.f32 1.0, %v2671_v16 }
 0x450   : > { %v2121_v23 = vsel %vm2120_vm3, %v2669_v41, %v2117_v17  ;;  %v2129_v24 = vmul.f32 %v2673_v18, %v1704_v3  ;;  %2674 = vpow2.f32 %v2476_v19  ;;  %vm2134_vm5 = vweird.f32 %v2673_v18 }
 0x451   : > { %v2126_v60 = vsel %vm2123_vm4, %v2125_v20, %v2121_v23  ;;  %2676 = vrcp.f32 %v1705_v21  ;;  %vm2135_vm7 = vmor %vm2133_vm6, %vm2134_vm5  ;;  %v2154_v39 = vand.u32 2147483648, %v1705_v21  ;;  %vm2148_vm9 = vweird.f32 %v1705_v21 }
 0x452   : > { %2215 = vst [vmem:[%s3431_s25 + $0xd8] sm:$0xff] %v2126_v60  ;;  %v2130_v25 = vsub.f32 1.0, %v2129_v24 }
 0x453   : > { %v1577_v28 = vpop.f32.mrf.mxu2  ;;  %v2155_v12 = vor.u32 1.1754944e-38, %v2154_v39 }
 0x454   : > { %v2131_v29 = vmul.f32 %v2673_v18, %v2130_v25  ;;  %v1578_v31 = vadd.f32 %v3497_v35, %v1577_v28  ;;  %v2152_v35 = vand.u32 2147483647, %v1705_v21 }
 0x456   : > { %v2675_v32 = vpop.eup %2674  ;;  %v2132_v2 = vadd.f32 %v2673_v18, %v2131_v29  ;;  %v2477_v34 = vmul.f32 -1.442695, %v1578_v31  ;;  %vm2153_vm11 = vcmp.eq.f32.partialorder %v2152_v35, 8.507059e+37 }
 0x457   : > { %v2677_v51 = vpop.eup %2676  ;;  %v1706_v36 = vadd.f32 1.0, %v2675_v32 }
 0x458   : > { %v2136_v15 = vsel %vm2135_vm7, %v2673_v18, %v2132_v2  ;;  %v2144_v38 = vmul.f32 %v2677_v51, %v1705_v21  ;;  %2678 = vpow2.f32 %v2477_v34  ;;  %vm2149_vm8 = vweird.f32 %v2677_v51 }
 0x459   : > { %v2141_v37 = vsel %vm2138_vm0, %v2140_v5, %v2136_v15  ;;  %2680 = vrcp.f32 %v1706_v36  ;;  %vm2150_vm10 = vmor %vm2148_vm9, %vm2149_vm8  ;;  %v2169_v55 = vand.u32 2147483648, %v1706_v36  ;;  %v2167_v53 = vand.u32 2147483647, %v1706_v36 }
 0x45a   : > { %2216 = vst [vmem:[%s3431_s25 + $0xe0] sm:$0xff] %v2141_v37  ;;  %v2145_v7 = vsub.f32 1.0, %v2144_v38  ;;  %vm2163_vm13 = vweird.f32 %v1706_v36 }
 0x45b   : > { %v2170_v57 = vor.u32 1.1754944e-38, %v2169_v55  ;;  %vm2168_vm15 = vcmp.eq.f32.partialorder %v2167_v53, 8.507059e+37 }
 0x45c   : > { %v2146_v43 = vmul.f32 %v2677_v51, %v2145_v7 }
 0x45e   : > { %v2679_v6 = vpop.eup %2678  ;;  %v2147_v44 = vadd.f32 %v2677_v51, %v2146_v43 }
 0x45f   : > { %v2681_v10 = vpop.eup %2680  ;;  %v1707_v46 = vadd.f32 1.0, %v2679_v6 }
 0x460   : > { %v2151_v48 = vsel %vm2150_vm10, %v2677_v51, %v2147_v44  ;;  %v2159_v50 = vmul.f32 %v2681_v10, %v1706_v36  ;;  %vm2164_vm12 = vweird.f32 %v2681_v10 }
 0x461   : > { %v2156_v40 = vsel %vm2153_vm11, %v2155_v12, %v2151_v48  ;;  %2682 = vrcp.f32 %v1707_v46  ;;  %vm2165_vm14 = vmor %vm2163_vm13, %vm2164_vm12  ;;  %v2184_v22 = vand.u32 2147483648, %v1707_v46  ;;  %v2182_v63 = vand.u32 2147483647, %v1707_v46 }
 0x462   : > { %2217 = vst [vmem:[%s3431_s25 + $0xe8] sm:$0xff] %v2156_v40  ;;  %v2160_v54 = vsub.f32 1.0, %v2159_v50  ;;  %vm2178_vm2 = vweird.f32 %v1707_v46 }
 0x463   : > { %v2185_v26 = vor.u32 1.1754944e-38, %v2184_v22  ;;  %vm2183_vm4 = vcmp.eq.f32.partialorder %v2182_v63, 8.507059e+37 }
 0x464   : > { %v2161_v14 = vmul.f32 %v2681_v10, %v2160_v54 }
 0x466   : > { %v2162_v56 = vadd.f32 %v2681_v10, %v2161_v14 }
 0x467   : > { %v2683_v42 = vpop.eup %2682 }
 0x468   : > { %v2166_v58 = vsel %vm2165_vm14, %v2681_v10, %v2162_v56  ;;  %v2174_v59 = vmul.f32 %v2683_v42, %v1707_v46  ;;  %vm2179_vm1 = vweird.f32 %v2683_v42 }
 0x469   : > { %v2171_v47 = vsel %vm2168_vm15, %v2170_v57, %v2166_v58  ;;  %vm2180_vm3 = vmor %vm2178_vm2, %vm2179_vm1 }
 0x46a   : > { %2218 = vst [vmem:[%s3431_s25 + $0xf0] sm:$0xff] %v2171_v47  ;;  %v2175_v61 = vsub.f32 1.0, %v2174_v59 }
 0x46c   : > { %v2176_v62 = vmul.f32 %v2683_v42, %v2175_v61 }
 0x46e   : > { %v2177_v49 = vadd.f32 %v2683_v42, %v2176_v62 }
 0x470   : > { %v2181_v41 = vsel %vm2180_vm3, %v2683_v42, %v2177_v49 }
 0x471   : > { %v2186_v1 = vsel %vm2183_vm4, %v2185_v26, %v2181_v41 }
 0x472   : > { %2219 = vst [vmem:[%s3431_s25 + $0xf8] sm:$0xff] %v2186_v1 }
 0x473   : > { %2742 = shalt.err (!%p2739_p4)
}
 0x474   : > { %s2785_s22 = smov 128   ;;  %s2786_s25 = smov 8  }
 0x475   : > { %2503 = dma.vmem_to_hbm [thread:$0]  (%p2897_p11), %s2234_s21, 4096, %s2236_s28, %s2221_s12, %s2785_s22, %s2785_s22, %s2786_s25  }
 0x476 PF: > { %s3581_s27 = sld [smem:[#allocation8_spill]]  ;;  %p3583_p7 = scmp.ge.s32.totalorder %s2781_s20, 2 }
 0x478   : > { %p2510_p5 = pnand %p3583_p7, %p2901_p12 }
 0x47a   : > { %p2511_p8 = pneg %p2510_p5 }
 0x47c   : > { %s2250_s16 = sand.u32 1, %s3581_s27  }
 0x47d   : > { %s2251_s13 = scalar_lea.sflag [#allocation4], %s2250_s16 }
 0x47e   : > { %2764 = dma.done.wait (%p2511_p8), %s2251_s13, 4096  }
 0x47f   : > { %2766 = vsyncadd (%p2511_p8), %s2251_s13, 4294963200  ;;  %s3584_s20 = sld [smem:[#allocation10_spill]]  ;;  %s3587_s17 = smov %s2773_s18 }
 0x480   : > { %s3585_s24 = sld [smem:[#allocation9_spill]] }
 0x481   : > { %s3586_s19 = sld [smem:[#allocation11_spill]] }
 0x485   : > { %p24_p10 = scmp.ge.s32.totalorder %s3584_s20, 4  }
 0x486   : > { %s3588_s18 = smov %s3585_s24 }
 0x487   :  { %26 = sbr.rel (!%p24_p10) target bundleno = 5 (0x5), region = 109 }
 0x48c   :  { %2257 = vsyncpa [#allocation3], 1 }
 0x48d   :  { %2259 = vsyncpa [#allocation3 + $0x1], 1 }
 0x48e   :  { %2260 = vsyncpa [#allocation4], 1 }
 0x48f   :  { %2262 = vsyncpa [#allocation4 + $0x1], 1 }

</bundles_post_ra>
